<compile_context>
chip_gen: v7x
topology: tpu7x:2x2x1
jax: 0.10.0
libtpu: 0.0.40
codegen_flags: <defaults>
</compile_context>

<pallas_src>
import functools

import jax
import jax.numpy as jnp
import numpy as np
from jax.experimental import pallas as pl
from jax.experimental.pallas import tpu as pltpu


_NEG_INF = -1e30                      # finite "-inf" (avoids inf - inf NaNs)
_LOG2_E = 1.4426950408889634          # folded into q columns -> scores are base-2
_LN_2 = 0.6931471805599453            # only used by the exp() fallback path


# ----------------------------------------------------------------------------
# Kernel 1: tiled QKV projection, emitted HEAD-MAJOR (no XLA transpose pass).
# ----------------------------------------------------------------------------
def _qkv_head_major_kernel(x_ref, w_ref, q_ref, k_ref, v_ref, *,
                           num_heads, head_dim):
    # x_ref: (1, tq, C) bf16;  w_ref: (C, 3C) bf16 (scale*log2e folded in q cols)
    # q_ref/k_ref/v_ref: (1, H, tq, hd) bf16 — written per head (static slices).
    x = x_ref[0]
    w = w_ref[...]
    qkv = jnp.dot(x, w, preferred_element_type=jnp.float32)   # (tq, 3C) f32 acc
    qkv = qkv.astype(q_ref.dtype)                              # one cast, then slice
    C = num_heads * head_dim
    for h in range(num_heads):                                 # static, unrolled
        o = h * head_dim
        q_ref[0, h, :, :] = qkv[:, o:o + head_dim]
        k_ref[0, h, :, :] = qkv[:, C + o:C + o + head_dim]
        v_ref[0, h, :, :] = qkv[:, 2 * C + o:2 * C + o + head_dim]


# ----------------------------------------------------------------------------
# Kernel 2: flash attention (base-2 online softmax) + fused output projection.
# ----------------------------------------------------------------------------
def _flash_attn_kernel(q_ref, k_ref, v_ref, wproj_ref, bias_ref, o_ref,
                       stats_sc, acc_sc, *, num_heads, use_exp2):
    # q_ref: (1,H,tq,hd)  k/v_ref: (1,H,tk,hd)  wproj_ref: (C,C)  bias_ref: (1,C)
    # o_ref: (1,tq,C)
    # stats_sc: (H,tq,128) f32 — lane 0: running max (base-2), lane 1: running sum
    # acc_sc:  (H,tq,hd) f32 — un-normalized context accumulator
    ki = pl.program_id(2)

    @pl.when(ki == 0)
    def _init():
        H, tq = stats_sc.shape[0], stats_sc.shape[1]
        stats_sc[:, :, 0:1] = jnp.full((H, tq, 1), _NEG_INF, jnp.float32)  # m
        stats_sc[:, :, 1:2] = jnp.zeros((H, tq, 1), jnp.float32)           # l
        acc_sc[...] = jnp.zeros(acc_sc.shape, acc_sc.dtype)

    q = q_ref[0]                                        # (H, tq, hd)
    k = k_ref[0]                                        # (H, tk, hd)
    v = v_ref[0]                                        # (H, tk, hd)

    # Batched-head MXU matmul; contraction on the last dims (no explicit k.T).
    # Scores are already in the log2 domain (scale * log2(e) folded into q).
    s = jnp.einsum("hqd,hkd->hqk", q, k,
                   preferred_element_type=jnp.float32)              # (H, tq, tk)

    m_prev = stats_sc[:, :, 0:1]
    l_prev = stats_sc[:, :, 1:2]
    m_new = jnp.maximum(m_prev, jnp.max(s, axis=-1, keepdims=True))
    if use_exp2:
        alpha = jnp.exp2(m_prev - m_new)                            # (H, tq, 1)
        p = jnp.exp2(s - m_new)                                     # (H, tq, tk)
    else:  # mathematically identical fallback
        alpha = jnp.exp((m_prev - m_new) * _LN_2)
        p = jnp.exp((s - m_new) * _LN_2)

    stats_sc[:, :, 1:2] = alpha * l_prev + jnp.sum(p, axis=-1, keepdims=True)
    acc_sc[...] = alpha * acc_sc[...] + jnp.einsum(
        "hqk,hkd->hqd", p.astype(v.dtype), v,                       # p -> bf16 MXU
        preferred_element_type=jnp.float32)
    stats_sc[:, :, 0:1] = m_new

    @pl.when(ki == pl.num_programs(2) - 1)
    def _finalize():
        l = stats_sc[:, :, 1:2]
        ctx = (acc_sc[...] / l).astype(wproj_ref.dtype)             # (H, tq, hd)
        # Head-concat folded into one lane-concat + a single K=C matmul
        # (full MXU fill, no serial per-head add chain); + proj bias.
        ctx_cat = jnp.concatenate([ctx[h] for h in range(num_heads)], axis=-1)
        out = jnp.dot(ctx_cat, wproj_ref[...],
                      preferred_element_type=jnp.float32)           # (tq, C)
        out = out + bias_ref[...]                                   # (1, C) f32
        o_ref[0] = out.astype(o_ref.dtype)                          # lane-dense


# ----------------------------------------------------------------------------
# Tiling / VMEM helpers
# ----------------------------------------------------------------------------
def _pick_block(n, target):
    """Largest divisor of n <= target that is a multiple of 128 (preferred) or
    16; falls back to the full axis."""
    t = min(target, n)
    for step in (128, 16):
        b = (t // step) * step
        while b >= step:
            if n % b == 0:
                return b
            b -= step
    return n


def _round_up(x, m):
    return ((x + m - 1) // m) * m


def _vmem_capacity_bytes():
    try:
        return int(pltpu.get_tpu_info().vmem_capacity_bytes)
    except Exception:
        return 64 * 1024 * 1024      # v7x-sized conservative fallback


def _attn_vmem_estimate(H, hd, tq, tk, C, in_bytes, out_bytes):
    """Rough per-step VMEM footprint of the attention kernel (incl. lane pad)."""
    lane_hd = _round_up(hd, 128)
    lane_c = _round_up(C, 128)
    lane_tk = _round_up(tk, 128)
    q_blk = 2 * H * tq * lane_hd * in_bytes             # double-buffered q tile
    kv_blk = 2 * 2 * H * tk * lane_hd * in_bytes        # double-buffered k + v
    w_res = C * lane_c * in_bytes + lane_c * 4          # resident w_proj + bias
    o_blk = 2 * tq * lane_c * out_bytes                 # double-buffered output
    scratch = H * tq * 128 * 4 + H * tq * lane_hd * 4   # stats + acc
    live = 3 * H * tq * lane_tk * 4                     # s, p & temps (rough)
    return q_blk + kv_blk + w_res + o_blk + scratch + live


# ----------------------------------------------------------------------------
# Wrapper
# ----------------------------------------------------------------------------
def multi_head_self_attention(x, w_qkv_t, w_proj_t, b_proj, *, num_heads,
                              block_q=512, block_k=256,
                              compute_dtype=jnp.bfloat16):
    """x: (B, N, C); w_qkv_t: (C, 3C); w_proj_t: (C, C); b_proj: (C,).

    Weights are pre-transposed nn.Linear weights (qkv_bias=False, proj has its
    default bias).  Matches qkv -> scaled dot-product softmax attention ->
    proj(+bias), with attn_drop = proj_drop = 0.0 (module defaults / eval).
    """
    x = jnp.asarray(x)
    w_qkv_t = jnp.asarray(w_qkv_t)
    w_proj_t = jnp.asarray(w_proj_t)
    b_proj = jnp.asarray(b_proj)

    B, N, C = x.shape
    assert C % num_heads == 0, "dim must be divisible by num_heads"
    head_dim = C // num_heads
    scale = float(head_dim) ** (-0.5)

    tq = _pick_block(N, block_q)
    tk = _pick_block(N, block_k)

    in_bytes = jnp.dtype(compute_dtype).itemsize
    out_bytes = jnp.dtype(x.dtype).itemsize
    vmem_cap = _vmem_capacity_bytes()
    # Shrink tiles until the estimated footprint fits the chip's VMEM
    # (v5e/v6e: 128 MiB -> keep big tiles; v7x: budget under 64 MiB).
    while (_attn_vmem_estimate(num_heads, head_dim, tq, tk, C,
                               in_bytes, out_bytes) > 0.7 * vmem_cap
           and (tq > 128 or tk > 128)):
        if tq >= tk and tq > 128:
            tq //= 2
        elif tk > 128:
            tk //= 2
        else:
            break
    n_q = N // tq
    n_k = N // tk
    vmem_limit = int(0.85 * vmem_cap)

    # Fold softmax scale AND log2(e) (base-2 softmax) into the q columns of the
    # qkv weight (zero runtime cost); bf16 MXU operands, f32 accumulation.
    w_qkv_c = w_qkv_t.at[:, :C].multiply(scale * _LOG2_E).astype(compute_dtype)
    w_proj_c = w_proj_t.astype(compute_dtype)
    b_proj_c = b_proj.reshape(1, C).astype(jnp.float32)
    x_c = x.astype(compute_dtype)

    def _forward(fast):
        if fast:
            # Whole-array resident weights in VMEM: single copy, no double buf.
            w_qkv_spec = pl.BlockSpec(memory_space=pltpu.MemorySpace.VMEM)
            w_proj_spec = pl.BlockSpec(memory_space=pltpu.MemorySpace.VMEM)
            bias_spec = pl.BlockSpec(memory_space=pltpu.MemorySpace.VMEM)
        else:
            w_qkv_spec = pl.BlockSpec((C, 3 * C), lambda b, i: (0, 0))
            w_proj_spec = pl.BlockSpec((C, C), lambda b, i, j: (0, 0))
            bias_spec = pl.BlockSpec((1, C), lambda b, i, j: (0, 0))

        # ---- Kernel 1: QKV projection, head-major output (no XLA transpose) --
        qkv_kernel = functools.partial(_qkv_head_major_kernel,
                                       num_heads=num_heads, head_dim=head_dim)
        q, k, v = pl.pallas_call(
            qkv_kernel,
            out_shape=[jax.ShapeDtypeStruct((B, num_heads, N, head_dim),
                                            compute_dtype)] * 3,
            grid_spec=pltpu.PrefetchScalarGridSpec(
                num_scalar_prefetch=0,
                grid=(B, n_q),
                in_specs=[
                    pl.BlockSpec((1, tq, C), lambda b, i: (b, i, 0)),
                    w_qkv_spec,
                ],
                out_specs=[
                    pl.BlockSpec((1, num_heads, tq, head_dim),
                                 lambda b, i: (b, 0, i, 0)),
                ] * 3,
            ),
            compiler_params=pltpu.CompilerParams(
                dimension_semantics=("parallel", "parallel"),
                vmem_limit_bytes=vmem_limit,
            ),
        )(x_c, w_qkv_c)
        # TODO(synk): for very large C (>= 2048) additionally tile the 3C axis
        # of the qkv weight so the resident slice stays small on v7x.

        # ---- Kernel 2: flash attention + fused output projection (+ bias) ----
        attn_kernel = functools.partial(_flash_attn_kernel,
                                        num_heads=num_heads, use_exp2=fast)
        out = pl.pallas_call(
            attn_kernel,
            out_shape=jax.ShapeDtypeStruct((B, N, C), x.dtype),
            grid_spec=pltpu.PrefetchScalarGridSpec(
                num_scalar_prefetch=0,
                grid=(B, n_q, n_k),                   # kv axis last ("arbitrary")
                in_specs=[
                    pl.BlockSpec((1, num_heads, tq, head_dim),
                                 lambda b, i, j: (b, 0, i, 0)),
                    pl.BlockSpec((1, num_heads, tk, head_dim),
                                 lambda b, i, j: (b, 0, j, 0)),
                    pl.BlockSpec((1, num_heads, tk, head_dim),
                                 lambda b, i, j: (b, 0, j, 0)),
                    w_proj_spec,
                    bias_spec,
                ],
                out_specs=pl.BlockSpec((1, tq, C), lambda b, i, j: (b, i, 0)),
                scratch_shapes=[
                    pltpu.VMEM((num_heads, tq, 128), jnp.float32),       # m | l
                    pltpu.VMEM((num_heads, tq, head_dim), jnp.float32),  # acc
                ],
            ),
            compiler_params=pltpu.CompilerParams(
                dimension_semantics=("parallel", "parallel", "arbitrary"),
                vmem_limit_bytes=vmem_limit,
            ),
        )(q, k, v, w_proj_c, b_proj_c)
        return out

    try:
        return _forward(fast=True)
    except Exception:
        # Conservative fallback (blocked weight specs + natural exp) — same
        # math; only taken if the faster constructs are unavailable.
        return _forward(fast=False)

    # TODO(synk): attn_drop / proj_drop omitted (p=0.0 module defaults -> identity).


# ----------------------------------------------------------------------------
# Pure-JAX reference mirroring the PyTorch forward (same bf16-operand /
# f32-accumulation policy as the kernel so the comparison isolates kernel bugs).
# ----------------------------------------------------------------------------
def _reference(x, w_qkv_t, w_proj_t, b_proj, num_heads,
               compute_dtype=jnp.bfloat16):
    B, N, C = x.shape
    head_dim = C // num_heads
    scale = float(head_dim) ** (-0.5)
    f32 = jnp.float32

    xq = x.astype(compute_dtype)
    wqkv = w_qkv_t.at[:, :C].multiply(scale).astype(compute_dtype)
    wproj = w_proj_t.astype(compute_dtype)

    qkv = jnp.einsum("bnc,cf->bnf", xq, wqkv, preferred_element_type=f32)
    qkv = qkv.astype(compute_dtype).reshape(B, N, 3, num_heads, head_dim)
    qkv = jnp.transpose(qkv, (2, 0, 3, 1, 4))        # (3, B, H, N, hd)
    q, k, v = qkv[0], qkv[1], qkv[2]                 # scale already folded into q
    attn = jnp.einsum("bhqd,bhkd->bhqk", q, k, preferred_element_type=f32)
    attn = jax.nn.softmax(attn, axis=-1)
    ctx = jnp.einsum("bhqk,bhkd->bhqd", attn.astype(compute_dtype), v,
                     preferred_element_type=f32)
    ctx = jnp.transpose(ctx, (0, 2, 1, 3)).reshape(B, N, C)
    out = jnp.einsum("bnc,cd->bnd", ctx.astype(compute_dtype), wproj,
                     preferred_element_type=f32)
    out = out + b_proj[None, None, :].astype(f32)
    return out.astype(x.dtype)


# ----------------------------------------------------------------------------
# Self-test
# ----------------------------------------------------------------------------
def _run_case(B, N, C, num_heads, block_q, block_k):
    key = jax.random.PRNGKey(0)
    kx, kq, kp, kb = jax.random.split(key, 4)
    x = jax.random.normal(kx, (B, N, C), dtype=jnp.float32)
    w_qkv_t = jax.random.normal(kq, (C, 3 * C), dtype=jnp.float32) * (1.0 / np.sqrt(C))
    w_proj_t = jax.random.normal(kp, (C, C), dtype=jnp.float32) * (1.0 / np.sqrt(C))
    b_proj = jax.random.normal(kb, (C,), dtype=jnp.float32) * 0.1

    out = multi_head_self_attention(x, w_qkv_t, w_proj_t, b_proj,
                                    num_heads=num_heads,
                                    block_q=block_q, block_k=block_k)
    out = jax.block_until_ready(out)
    ref = _reference(x, w_qkv_t, w_proj_t, b_proj, num_heads)
    np.testing.assert_allclose(np.asarray(out), np.asarray(ref),
                               rtol=2e-2, atol=2e-2)


if __name__ == "__main__":
    # Tiny shape consistent with the module: (B, N, C) = (2, 8, 32), 8 heads.
    _run_case(2, 8, 32, 8, 256, 256)
    # Multi-kv-step path: n_q = n_k = 4, head_dim = 64 — exercises the online
    # softmax carry, pl.when init/finalize gating and the head-major relayout.
    _run_case(1, 256, 128, 2, 64, 64)
    print("KERNEL_OK")
</pallas_src>

<mosaic_0001>
module attributes {stable_mosaic.version = 11 : i64} {
  func.func @_qkv_head_major_kernel(%arg0: i32, %arg1: i32, %arg2: memref<1x8x32xbf16, #tpu.memory_space<vmem>>, %arg3: memref<32x96xbf16, #tpu.memory_space<vmem>>, %arg4: memref<1x8x8x4xbf16, #tpu.memory_space<vmem>>, %arg5: memref<1x8x8x4xbf16, #tpu.memory_space<vmem>>, %arg6: memref<1x8x8x4xbf16, #tpu.memory_space<vmem>>) attributes {dimension_semantics = [#tpu.dimension_semantics<parallel>, #tpu.dimension_semantics<parallel>], iteration_bounds = array<i64: 2, 1>, scalar_prefetch = 0 : i64, scratch_operands = 0 : i64, tpu.core_type = #tpu.core_type<tc>, window_params = [{transform_indices = @transform_0, window_bounds = array<i64: 1, 8, 32>}, {pipeline_mode = #tpu.pipeline_mode<synchronous>, transform_indices = @transform_1, window_bounds = array<i64: 32, 96>}, {transform_indices = @transform_2, window_bounds = array<i64: 1, 8, 8, 4>}, {transform_indices = @transform_3, window_bounds = array<i64: 1, 8, 8, 4>}, {transform_indices = @transform_4, window_bounds = array<i64: 1, 8, 8, 4>}]} {
    %c0 = arith.constant 0 : index
    %c0_0 = arith.constant 0 : index
    %c0_1 = arith.constant 0 : index
    %0 = vector.load %arg2[%c0, %c0_0, %c0_1] : memref<1x8x32xbf16, #tpu.memory_space<vmem>>, vector<1x8x32xbf16>
    %1 = vector.shape_cast %0 : vector<1x8x32xbf16> to vector<8x32xbf16>
    %c0_2 = arith.constant 0 : index
    %c0_3 = arith.constant 0 : index
    %2 = vector.load %arg3[%c0_2, %c0_3] : memref<32x96xbf16, #tpu.memory_space<vmem>>, vector<32x96xbf16>
    %cst = arith.constant dense<0.000000e+00> : vector<8x96xf32>
    %3 = tpu.matmul %1, %2, %cst {dimension_numbers = #tpu.dot_dimension_numbers<[1], [0], [0], [1], [0, 0, 1, 1], [], []>} : vector<8x32xbf16>, vector<32x96xbf16>, vector<8x96xf32> -> vector<8x96xf32>
    %4 = arith.truncf %3 : vector<8x96xf32> to vector<8x96xbf16>
    %5 = vector.extract_strided_slice %4 {offsets = [0, 0], sizes = [8, 4], strides = [1, 1]} : vector<8x96xbf16> to vector<8x4xbf16>
    %c0_4 = arith.constant 0 : index
    %c0_5 = arith.constant 0 : index
    %c0_6 = arith.constant 0 : index
    %c0_7 = arith.constant 0 : index
    %6 = vector.load %arg4[%c0_4, %c0_5, %c0_6, %c0_7] : memref<1x8x8x4xbf16, #tpu.memory_space<vmem>>, vector<1x1x8x4xbf16>
    %7 = vector.shape_cast %6 : vector<1x1x8x4xbf16> to vector<8x4xbf16>
    %8 = vector.shape_cast %5 : vector<8x4xbf16> to vector<1x1x8x4xbf16>
    tpu.vector_store %arg4[%c0_4, %c0_5, %c0_6, %c0_7], %8 {strides = array<i32>} : memref<1x8x8x4xbf16, #tpu.memory_space<vmem>>, vector<1x1x8x4xbf16>,
    %9 = vector.extract_strided_slice %4 {offsets = [0, 32], sizes = [8, 4], strides = [1, 1]} : vector<8x96xbf16> to vector<8x4xbf16>
    %c0_8 = arith.constant 0 : index
    %c0_9 = arith.constant 0 : index
    %c0_10 = arith.constant 0 : index
    %c0_11 = arith.constant 0 : index
    %10 = vector.load %arg5[%c0_8, %c0_9, %c0_10, %c0_11] : memref<1x8x8x4xbf16, #tpu.memory_space<vmem>>, vector<1x1x8x4xbf16>
    %11 = vector.shape_cast %10 : vector<1x1x8x4xbf16> to vector<8x4xbf16>
    %12 = vector.shape_cast %9 : vector<8x4xbf16> to vector<1x1x8x4xbf16>
    tpu.vector_store %arg5[%c0_8, %c0_9, %c0_10, %c0_11], %12 {strides = array<i32>} : memref<1x8x8x4xbf16, #tpu.memory_space<vmem>>, vector<1x1x8x4xbf16>,
    %13 = vector.extract_strided_slice %4 {offsets = [0, 64], sizes = [8, 4], strides = [1, 1]} : vector<8x96xbf16> to vector<8x4xbf16>
    %c0_12 = arith.constant 0 : index
    %c0_13 = arith.constant 0 : index
    %c0_14 = arith.constant 0 : index
    %c0_15 = arith.constant 0 : index
    %14 = vector.load %arg6[%c0_12, %c0_13, %c0_14, %c0_15] : memref<1x8x8x4xbf16, #tpu.memory_space<vmem>>, vector<1x1x8x4xbf16>
    %15 = vector.shape_cast %14 : vector<1x1x8x4xbf16> to vector<8x4xbf16>
    %16 = vector.shape_cast %13 : vector<8x4xbf16> to vector<1x1x8x4xbf16>
    tpu.vector_store %arg6[%c0_12, %c0_13, %c0_14, %c0_15], %16 {strides = array<i32>} : memref<1x8x8x4xbf16, #tpu.memory_space<vmem>>, vector<1x1x8x4xbf16>,
    %17 = vector.extract_strided_slice %4 {offsets = [0, 4], sizes = [8, 4], strides = [1, 1]} : vector<8x96xbf16> to vector<8x4xbf16>
    %c0_16 = arith.constant 0 : index
    %c1 = arith.constant 1 : index
    %c0_17 = arith.constant 0 : index
    %c0_18 = arith.constant 0 : index
    %18 = vector.load %arg4[%c0_16, %c1, %c0_17, %c0_18] : memref<1x8x8x4xbf16, #tpu.memory_space<vmem>>, vector<1x1x8x4xbf16>
    %19 = vector.shape_cast %18 : vector<1x1x8x4xbf16> to vector<8x4xbf16>
    %20 = vector.shape_cast %17 : vector<8x4xbf16> to vector<1x1x8x4xbf16>
    tpu.vector_store %arg4[%c0_16, %c1, %c0_17, %c0_18], %20 {strides = array<i32>} : memref<1x8x8x4xbf16, #tpu.memory_space<vmem>>, vector<1x1x8x4xbf16>,
    %21 = vector.extract_strided_slice %4 {offsets = [0, 36], sizes = [8, 4], strides = [1, 1]} : vector<8x96xbf16> to vector<8x4xbf16>
    %c0_19 = arith.constant 0 : index
    %c1_20 = arith.constant 1 : index
    %c0_21 = arith.constant 0 : index
    %c0_22 = arith.constant 0 : index
    %22 = vector.load %arg5[%c0_19, %c1_20, %c0_21, %c0_22] : memref<1x8x8x4xbf16, #tpu.memory_space<vmem>>, vector<1x1x8x4xbf16>
    %23 = vector.shape_cast %22 : vector<1x1x8x4xbf16> to vector<8x4xbf16>
    %24 = vector.shape_cast %21 : vector<8x4xbf16> to vector<1x1x8x4xbf16>
    tpu.vector_store %arg5[%c0_19, %c1_20, %c0_21, %c0_22], %24 {strides = array<i32>} : memref<1x8x8x4xbf16, #tpu.memory_space<vmem>>, vector<1x1x8x4xbf16>,
    %25 = vector.extract_strided_slice %4 {offsets = [0, 68], sizes = [8, 4], strides = [1, 1]} : vector<8x96xbf16> to vector<8x4xbf16>
    %c0_23 = arith.constant 0 : index
    %c1_24 = arith.constant 1 : index
    %c0_25 = arith.constant 0 : index
    %c0_26 = arith.constant 0 : index
    %26 = vector.load %arg6[%c0_23, %c1_24, %c0_25, %c0_26] : memref<1x8x8x4xbf16, #tpu.memory_space<vmem>>, vector<1x1x8x4xbf16>
    %27 = vector.shape_cast %26 : vector<1x1x8x4xbf16> to vector<8x4xbf16>
    %28 = vector.shape_cast %25 : vector<8x4xbf16> to vector<1x1x8x4xbf16>
    tpu.vector_store %arg6[%c0_23, %c1_24, %c0_25, %c0_26], %28 {strides = array<i32>} : memref<1x8x8x4xbf16, #tpu.memory_space<vmem>>, vector<1x1x8x4xbf16>,
    %29 = vector.extract_strided_slice %4 {offsets = [0, 8], sizes = [8, 4], strides = [1, 1]} : vector<8x96xbf16> to vector<8x4xbf16>
    %c0_27 = arith.constant 0 : index
    %c2 = arith.constant 2 : index
    %c0_28 = arith.constant 0 : index
    %c0_29 = arith.constant 0 : index
    %30 = vector.load %arg4[%c0_27, %c2, %c0_28, %c0_29] : memref<1x8x8x4xbf16, #tpu.memory_space<vmem>>, vector<1x1x8x4xbf16>
    %31 = vector.shape_cast %30 : vector<1x1x8x4xbf16> to vector<8x4xbf16>
    %32 = vector.shape_cast %29 : vector<8x4xbf16> to vector<1x1x8x4xbf16>
    tpu.vector_store %arg4[%c0_27, %c2, %c0_28, %c0_29], %32 {strides = array<i32>} : memref<1x8x8x4xbf16, #tpu.memory_space<vmem>>, vector<1x1x8x4xbf16>,
    %33 = vector.extract_strided_slice %4 {offsets = [0, 40], sizes = [8, 4], strides = [1, 1]} : vector<8x96xbf16> to vector<8x4xbf16>
    %c0_30 = arith.constant 0 : index
    %c2_31 = arith.constant 2 : index
    %c0_32 = arith.constant 0 : index
    %c0_33 = arith.constant 0 : index
    %34 = vector.load %arg5[%c0_30, %c2_31, %c0_32, %c0_33] : memref<1x8x8x4xbf16, #tpu.memory_space<vmem>>, vector<1x1x8x4xbf16>
    %35 = vector.shape_cast %34 : vector<1x1x8x4xbf16> to vector<8x4xbf16>
    %36 = vector.shape_cast %33 : vector<8x4xbf16> to vector<1x1x8x4xbf16>
    tpu.vector_store %arg5[%c0_30, %c2_31, %c0_32, %c0_33], %36 {strides = array<i32>} : memref<1x8x8x4xbf16, #tpu.memory_space<vmem>>, vector<1x1x8x4xbf16>,
    %37 = vector.extract_strided_slice %4 {offsets = [0, 72], sizes = [8, 4], strides = [1, 1]} : vector<8x96xbf16> to vector<8x4xbf16>
    %c0_34 = arith.constant 0 : index
    %c2_35 = arith.constant 2 : index
    %c0_36 = arith.constant 0 : index
    %c0_37 = arith.constant 0 : index
    %38 = vector.load %arg6[%c0_34, %c2_35, %c0_36, %c0_37] : memref<1x8x8x4xbf16, #tpu.memory_space<vmem>>, vector<1x1x8x4xbf16>
    %39 = vector.shape_cast %38 : vector<1x1x8x4xbf16> to vector<8x4xbf16>
    %40 = vector.shape_cast %37 : vector<8x4xbf16> to vector<1x1x8x4xbf16>
    tpu.vector_store %arg6[%c0_34, %c2_35, %c0_36, %c0_37], %40 {strides = array<i32>} : memref<1x8x8x4xbf16, #tpu.memory_space<vmem>>, vector<1x1x8x4xbf16>,
    %41 = vector.extract_strided_slice %4 {offsets = [0, 12], sizes = [8, 4], strides = [1, 1]} : vector<8x96xbf16> to vector<8x4xbf16>
    %c0_38 = arith.constant 0 : index
    %c3 = arith.constant 3 : index
    %c0_39 = arith.constant 0 : index
    %c0_40 = arith.constant 0 : index
    %42 = vector.load %arg4[%c0_38, %c3, %c0_39, %c0_40] : memref<1x8x8x4xbf16, #tpu.memory_space<vmem>>, vector<1x1x8x4xbf16>
    %43 = vector.shape_cast %42 : vector<1x1x8x4xbf16> to vector<8x4xbf16>
    %44 = vector.shape_cast %41 : vector<8x4xbf16> to vector<1x1x8x4xbf16>
    tpu.vector_store %arg4[%c0_38, %c3, %c0_39, %c0_40], %44 {strides = array<i32>} : memref<1x8x8x4xbf16, #tpu.memory_space<vmem>>, vector<1x1x8x4xbf16>,
    %45 = vector.extract_strided_slice %4 {offsets = [0, 44], sizes = [8, 4], strides = [1, 1]} : vector<8x96xbf16> to vector<8x4xbf16>
    %c0_41 = arith.constant 0 : index
    %c3_42 = arith.constant 3 : index
    %c0_43 = arith.constant 0 : index
    %c0_44 = arith.constant 0 : index
    %46 = vector.load %arg5[%c0_41, %c3_42, %c0_43, %c0_44] : memref<1x8x8x4xbf16, #tpu.memory_space<vmem>>, vector<1x1x8x4xbf16>
    %47 = vector.shape_cast %46 : vector<1x1x8x4xbf16> to vector<8x4xbf16>
    %48 = vector.shape_cast %45 : vector<8x4xbf16> to vector<1x1x8x4xbf16>
    tpu.vector_store %arg5[%c0_41, %c3_42, %c0_43, %c0_44], %48 {strides = array<i32>} : memref<1x8x8x4xbf16, #tpu.memory_space<vmem>>, vector<1x1x8x4xbf16>,
    %49 = vector.extract_strided_slice %4 {offsets = [0, 76], sizes = [8, 4], strides = [1, 1]} : vector<8x96xbf16> to vector<8x4xbf16>
    %c0_45 = arith.constant 0 : index
    %c3_46 = arith.constant 3 : index
    %c0_47 = arith.constant 0 : index
    %c0_48 = arith.constant 0 : index
    %50 = vector.load %arg6[%c0_45, %c3_46, %c0_47, %c0_48] : memref<1x8x8x4xbf16, #tpu.memory_space<vmem>>, vector<1x1x8x4xbf16>
    %51 = vector.shape_cast %50 : vector<1x1x8x4xbf16> to vector<8x4xbf16>
    %52 = vector.shape_cast %49 : vector<8x4xbf16> to vector<1x1x8x4xbf16>
    tpu.vector_store %arg6[%c0_45, %c3_46, %c0_47, %c0_48], %52 {strides = array<i32>} : memref<1x8x8x4xbf16, #tpu.memory_space<vmem>>, vector<1x1x8x4xbf16>,
    %53 = vector.extract_strided_slice %4 {offsets = [0, 16], sizes = [8, 4], strides = [1, 1]} : vector<8x96xbf16> to vector<8x4xbf16>
    %c0_49 = arith.constant 0 : index
    %c4 = arith.constant 4 : index
    %c0_50 = arith.constant 0 : index
    %c0_51 = arith.constant 0 : index
    %54 = vector.load %arg4[%c0_49, %c4, %c0_50, %c0_51] : memref<1x8x8x4xbf16, #tpu.memory_space<vmem>>, vector<1x1x8x4xbf16>
    %55 = vector.shape_cast %54 : vector<1x1x8x4xbf16> to vector<8x4xbf16>
    %56 = vector.shape_cast %53 : vector<8x4xbf16> to vector<1x1x8x4xbf16>
    tpu.vector_store %arg4[%c0_49, %c4, %c0_50, %c0_51], %56 {strides = array<i32>} : memref<1x8x8x4xbf16, #tpu.memory_space<vmem>>, vector<1x1x8x4xbf16>,
    %57 = vector.extract_strided_slice %4 {offsets = [0, 48], sizes = [8, 4], strides = [1, 1]} : vector<8x96xbf16> to vector<8x4xbf16>
    %c0_52 = arith.constant 0 : index
    %c4_53 = arith.constant 4 : index
    %c0_54 = arith.constant 0 : index
    %c0_55 = arith.constant 0 : index
    %58 = vector.load %arg5[%c0_52, %c4_53, %c0_54, %c0_55] : memref<1x8x8x4xbf16, #tpu.memory_space<vmem>>, vector<1x1x8x4xbf16>
    %59 = vector.shape_cast %58 : vector<1x1x8x4xbf16> to vector<8x4xbf16>
    %60 = vector.shape_cast %57 : vector<8x4xbf16> to vector<1x1x8x4xbf16>
    tpu.vector_store %arg5[%c0_52, %c4_53, %c0_54, %c0_55], %60 {strides = array<i32>} : memref<1x8x8x4xbf16, #tpu.memory_space<vmem>>, vector<1x1x8x4xbf16>,
    %61 = vector.extract_strided_slice %4 {offsets = [0, 80], sizes = [8, 4], strides = [1, 1]} : vector<8x96xbf16> to vector<8x4xbf16>
    %c0_56 = arith.constant 0 : index
    %c4_57 = arith.constant 4 : index
    %c0_58 = arith.constant 0 : index
    %c0_59 = arith.constant 0 : index
    %62 = vector.load %arg6[%c0_56, %c4_57, %c0_58, %c0_59] : memref<1x8x8x4xbf16, #tpu.memory_space<vmem>>, vector<1x1x8x4xbf16>
    %63 = vector.shape_cast %62 : vector<1x1x8x4xbf16> to vector<8x4xbf16>
    %64 = vector.shape_cast %61 : vector<8x4xbf16> to vector<1x1x8x4xbf16>
    tpu.vector_store %arg6[%c0_56, %c4_57, %c0_58, %c0_59], %64 {strides = array<i32>} : memref<1x8x8x4xbf16, #tpu.memory_space<vmem>>, vector<1x1x8x4xbf16>,
    %65 = vector.extract_strided_slice %4 {offsets = [0, 20], sizes = [8, 4], strides = [1, 1]} : vector<8x96xbf16> to vector<8x4xbf16>
    %c0_60 = arith.constant 0 : index
    %c5 = arith.constant 5 : index
    %c0_61 = arith.constant 0 : index
    %c0_62 = arith.constant 0 : index
    %66 = vector.load %arg4[%c0_60, %c5, %c0_61, %c0_62] : memref<1x8x8x4xbf16, #tpu.memory_space<vmem>>, vector<1x1x8x4xbf16>
    %67 = vector.shape_cast %66 : vector<1x1x8x4xbf16> to vector<8x4xbf16>
    %68 = vector.shape_cast %65 : vector<8x4xbf16> to vector<1x1x8x4xbf16>
    tpu.vector_store %arg4[%c0_60, %c5, %c0_61, %c0_62], %68 {strides = array<i32>} : memref<1x8x8x4xbf16, #tpu.memory_space<vmem>>, vector<1x1x8x4xbf16>,
    %69 = vector.extract_strided_slice %4 {offsets = [0, 52], sizes = [8, 4], strides = [1, 1]} : vector<8x96xbf16> to vector<8x4xbf16>
    %c0_63 = arith.constant 0 : index
    %c5_64 = arith.constant 5 : index
    %c0_65 = arith.constant 0 : index
    %c0_66 = arith.constant 0 : index
    %70 = vector.load %arg5[%c0_63, %c5_64, %c0_65, %c0_66] : memref<1x8x8x4xbf16, #tpu.memory_space<vmem>>, vector<1x1x8x4xbf16>
    %71 = vector.shape_cast %70 : vector<1x1x8x4xbf16> to vector<8x4xbf16>
    %72 = vector.shape_cast %69 : vector<8x4xbf16> to vector<1x1x8x4xbf16>
    tpu.vector_store %arg5[%c0_63, %c5_64, %c0_65, %c0_66], %72 {strides = array<i32>} : memref<1x8x8x4xbf16, #tpu.memory_space<vmem>>, vector<1x1x8x4xbf16>,
    %73 = vector.extract_strided_slice %4 {offsets = [0, 84], sizes = [8, 4], strides = [1, 1]} : vector<8x96xbf16> to vector<8x4xbf16>
    %c0_67 = arith.constant 0 : index
    %c5_68 = arith.constant 5 : index
    %c0_69 = arith.constant 0 : index
    %c0_70 = arith.constant 0 : index
    %74 = vector.load %arg6[%c0_67, %c5_68, %c0_69, %c0_70] : memref<1x8x8x4xbf16, #tpu.memory_space<vmem>>, vector<1x1x8x4xbf16>
    %75 = vector.shape_cast %74 : vector<1x1x8x4xbf16> to vector<8x4xbf16>
    %76 = vector.shape_cast %73 : vector<8x4xbf16> to vector<1x1x8x4xbf16>
    tpu.vector_store %arg6[%c0_67, %c5_68, %c0_69, %c0_70], %76 {strides = array<i32>} : memref<1x8x8x4xbf16, #tpu.memory_space<vmem>>, vector<1x1x8x4xbf16>,
    %77 = vector.extract_strided_slice %4 {offsets = [0, 24], sizes = [8, 4], strides = [1, 1]} : vector<8x96xbf16> to vector<8x4xbf16>
    %c0_71 = arith.constant 0 : index
    %c6 = arith.constant 6 : index
    %c0_72 = arith.constant 0 : index
    %c0_73 = arith.constant 0 : index
    %78 = vector.load %arg4[%c0_71, %c6, %c0_72, %c0_73] : memref<1x8x8x4xbf16, #tpu.memory_space<vmem>>, vector<1x1x8x4xbf16>
    %79 = vector.shape_cast %78 : vector<1x1x8x4xbf16> to vector<8x4xbf16>
    %80 = vector.shape_cast %77 : vector<8x4xbf16> to vector<1x1x8x4xbf16>
    tpu.vector_store %arg4[%c0_71, %c6, %c0_72, %c0_73], %80 {strides = array<i32>} : memref<1x8x8x4xbf16, #tpu.memory_space<vmem>>, vector<1x1x8x4xbf16>,
    %81 = vector.extract_strided_slice %4 {offsets = [0, 56], sizes = [8, 4], strides = [1, 1]} : vector<8x96xbf16> to vector<8x4xbf16>
    %c0_74 = arith.constant 0 : index
    %c6_75 = arith.constant 6 : index
    %c0_76 = arith.constant 0 : index
    %c0_77 = arith.constant 0 : index
    %82 = vector.load %arg5[%c0_74, %c6_75, %c0_76, %c0_77] : memref<1x8x8x4xbf16, #tpu.memory_space<vmem>>, vector<1x1x8x4xbf16>
    %83 = vector.shape_cast %82 : vector<1x1x8x4xbf16> to vector<8x4xbf16>
    %84 = vector.shape_cast %81 : vector<8x4xbf16> to vector<1x1x8x4xbf16>
    tpu.vector_store %arg5[%c0_74, %c6_75, %c0_76, %c0_77], %84 {strides = array<i32>} : memref<1x8x8x4xbf16, #tpu.memory_space<vmem>>, vector<1x1x8x4xbf16>,
    %85 = vector.extract_strided_slice %4 {offsets = [0, 88], sizes = [8, 4], strides = [1, 1]} : vector<8x96xbf16> to vector<8x4xbf16>
    %c0_78 = arith.constant 0 : index
    %c6_79 = arith.constant 6 : index
    %c0_80 = arith.constant 0 : index
    %c0_81 = arith.constant 0 : index
    %86 = vector.load %arg6[%c0_78, %c6_79, %c0_80, %c0_81] : memref<1x8x8x4xbf16, #tpu.memory_space<vmem>>, vector<1x1x8x4xbf16>
    %87 = vector.shape_cast %86 : vector<1x1x8x4xbf16> to vector<8x4xbf16>
    %88 = vector.shape_cast %85 : vector<8x4xbf16> to vector<1x1x8x4xbf16>
    tpu.vector_store %arg6[%c0_78, %c6_79, %c0_80, %c0_81], %88 {strides = array<i32>} : memref<1x8x8x4xbf16, #tpu.memory_space<vmem>>, vector<1x1x8x4xbf16>,
    %89 = vector.extract_strided_slice %4 {offsets = [0, 28], sizes = [8, 4], strides = [1, 1]} : vector<8x96xbf16> to vector<8x4xbf16>
    %c0_82 = arith.constant 0 : index
    %c7 = arith.constant 7 : index
    %c0_83 = arith.constant 0 : index
    %c0_84 = arith.constant 0 : index
    %90 = vector.load %arg4[%c0_82, %c7, %c0_83, %c0_84] : memref<1x8x8x4xbf16, #tpu.memory_space<vmem>>, vector<1x1x8x4xbf16>
    %91 = vector.shape_cast %90 : vector<1x1x8x4xbf16> to vector<8x4xbf16>
    %92 = vector.shape_cast %89 : vector<8x4xbf16> to vector<1x1x8x4xbf16>
    tpu.vector_store %arg4[%c0_82, %c7, %c0_83, %c0_84], %92 {strides = array<i32>} : memref<1x8x8x4xbf16, #tpu.memory_space<vmem>>, vector<1x1x8x4xbf16>,
    %93 = vector.extract_strided_slice %4 {offsets = [0, 60], sizes = [8, 4], strides = [1, 1]} : vector<8x96xbf16> to vector<8x4xbf16>
    %c0_85 = arith.constant 0 : index
    %c7_86 = arith.constant 7 : index
    %c0_87 = arith.constant 0 : index
    %c0_88 = arith.constant 0 : index
    %94 = vector.load %arg5[%c0_85, %c7_86, %c0_87, %c0_88] : memref<1x8x8x4xbf16, #tpu.memory_space<vmem>>, vector<1x1x8x4xbf16>
    %95 = vector.shape_cast %94 : vector<1x1x8x4xbf16> to vector<8x4xbf16>
    %96 = vector.shape_cast %93 : vector<8x4xbf16> to vector<1x1x8x4xbf16>
    tpu.vector_store %arg5[%c0_85, %c7_86, %c0_87, %c0_88], %96 {strides = array<i32>} : memref<1x8x8x4xbf16, #tpu.memory_space<vmem>>, vector<1x1x8x4xbf16>,
    %97 = vector.extract_strided_slice %4 {offsets = [0, 92], sizes = [8, 4], strides = [1, 1]} : vector<8x96xbf16> to vector<8x4xbf16>
    %c0_89 = arith.constant 0 : index
    %c7_90 = arith.constant 7 : index
    %c0_91 = arith.constant 0 : index
    %c0_92 = arith.constant 0 : index
    %98 = vector.load %arg6[%c0_89, %c7_90, %c0_91, %c0_92] : memref<1x8x8x4xbf16, #tpu.memory_space<vmem>>, vector<1x1x8x4xbf16>
    %99 = vector.shape_cast %98 : vector<1x1x8x4xbf16> to vector<8x4xbf16>
    %100 = vector.shape_cast %97 : vector<8x4xbf16> to vector<1x1x8x4xbf16>
    tpu.vector_store %arg6[%c0_89, %c7_90, %c0_91, %c0_92], %100 {strides = array<i32>} : memref<1x8x8x4xbf16, #tpu.memory_space<vmem>>, vector<1x1x8x4xbf16>,
    return
  }
  func.func @transform_0(%arg0: i32, %arg1: i32) -> (i32, i32, i32) {
    %c0_i32 = arith.constant 0 : i32
    %c0_i32_0 = arith.constant 0 : i32
    return %arg0, %arg1, %c0_i32 : i32, i32, i32
  }
  func.func @transform_1(%arg0: i32, %arg1: i32) -> (i32, i32) {
    %c0_i32 = arith.constant 0 : i32
    %c0_i32_0 = arith.constant 0 : i32
    %c0_i32_1 = arith.constant 0 : i32
    return %c0_i32, %c0_i32_0 : i32, i32
  }
  func.func @transform_2(%arg0: i32, %arg1: i32) -> (i32, i32, i32, i32) {
    %c0_i32 = arith.constant 0 : i32
    %c0_i32_0 = arith.constant 0 : i32
    %c0_i32_1 = arith.constant 0 : i32
    return %arg0, %c0_i32, %arg1, %c0_i32_0 : i32, i32, i32, i32
  }
  func.func @transform_3(%arg0: i32, %arg1: i32) -> (i32, i32, i32, i32) {
    %c0_i32 = arith.constant 0 : i32
    %c0_i32_0 = arith.constant 0 : i32
    %c0_i32_1 = arith.constant 0 : i32
    return %arg0, %c0_i32, %arg1, %c0_i32_0 : i32, i32, i32, i32
  }
  func.func @transform_4(%arg0: i32, %arg1: i32) -> (i32, i32, i32, i32) {
    %c0_i32 = arith.constant 0 : i32
    %c0_i32_0 = arith.constant 0 : i32
    %c0_i32_1 = arith.constant 0 : i32
    return %arg0, %c0_i32, %arg1, %c0_i32_0 : i32, i32, i32, i32
  }
}

module attributes {stable_mosaic.version = 11 : i64} {
  func.func @_qkv_head_major_kernel(%arg0: i32, %arg1: i32, %arg2: memref<1x8x32xbf16, #tpu.memory_space<vmem>>, %arg3: memref<32x96xbf16, #tpu.memory_space<vmem>>, %arg4: memref<1x8x8x4xbf16, #tpu.memory_space<vmem>>, %arg5: memref<1x8x8x4xbf16, #tpu.memory_space<vmem>>, %arg6: memref<1x8x8x4xbf16, #tpu.memory_space<vmem>>) attributes {dimension_semantics = [#tpu.dimension_semantics<parallel>, #tpu.dimension_semantics<parallel>], iteration_bounds = array<i64: 2, 1>, scalar_prefetch = 0 : i64, scratch_operands = 0 : i64, tpu.core_type = #tpu.core_type<tc>, window_params = [{transform_indices = @transform_0, window_bounds = array<i64: 1, 8, 32>}, {pipeline_mode = #tpu.pipeline_mode<synchronous>, transform_indices = @transform_1, window_bounds = array<i64: 32, 96>}, {transform_indices = @transform_2, window_bounds = array<i64: 1, 8, 8, 4>}, {transform_indices = @transform_3, window_bounds = array<i64: 1, 8, 8, 4>}, {transform_indices = @transform_4, window_bounds = array<i64: 1, 8, 8, 4>}]} {
    %c0 = arith.constant 0 : index
    %c0_0 = arith.constant 0 : index
    %c0_1 = arith.constant 0 : index
    %0 = vector.load %arg2[%c0, %c0_0, %c0_1] : memref<1x8x32xbf16, #tpu.memory_space<vmem>>, vector<1x8x32xbf16>
    %1 = vector.shape_cast %0 : vector<1x8x32xbf16> to vector<8x32xbf16>
    %c0_2 = arith.constant 0 : index
    %c0_3 = arith.constant 0 : index
    %2 = vector.load %arg3[%c0_2, %c0_3] : memref<32x96xbf16, #tpu.memory_space<vmem>>, vector<32x96xbf16>
    %cst = arith.constant dense<0.000000e+00> : vector<8x96xf32>
    %3 = tpu.matmul %1, %2, %cst {dimension_numbers = #tpu.dot_dimension_numbers<[1], [0], [0], [1], [0, 0, 1, 1], [], []>} : vector<8x32xbf16>, vector<32x96xbf16>, vector<8x96xf32> -> vector<8x96xf32>
    %4 = arith.truncf %3 : vector<8x96xf32> to vector<8x96xbf16>
    %5 = vector.extract_strided_slice %4 {offsets = [0, 0], sizes = [8, 4], strides = [1, 1]} : vector<8x96xbf16> to vector<8x4xbf16>
    %c0_4 = arith.constant 0 : index
    %c0_5 = arith.constant 0 : index
    %c0_6 = arith.constant 0 : index
    %c0_7 = arith.constant 0 : index
    %6 = vector.load %arg4[%c0_4, %c0_5, %c0_6, %c0_7] : memref<1x8x8x4xbf16, #tpu.memory_space<vmem>>, vector<1x1x8x4xbf16>
    %7 = vector.shape_cast %6 : vector<1x1x8x4xbf16> to vector<8x4xbf16>
    %8 = vector.shape_cast %5 : vector<8x4xbf16> to vector<1x1x8x4xbf16>
    tpu.vector_store %arg4[%c0_4, %c0_5, %c0_6, %c0_7], %8 {strides = array<i32>} : memref<1x8x8x4xbf16, #tpu.memory_space<vmem>>, vector<1x1x8x4xbf16>,
    %9 = vector.extract_strided_slice %4 {offsets = [0, 32], sizes = [8, 4], strides = [1, 1]} : vector<8x96xbf16> to vector<8x4xbf16>
    %c0_8 = arith.constant 0 : index
    %c0_9 = arith.constant 0 : index
    %c0_10 = arith.constant 0 : index
    %c0_11 = arith.constant 0 : index
    %10 = vector.load %arg5[%c0_8, %c0_9, %c0_10, %c0_11] : memref<1x8x8x4xbf16, #tpu.memory_space<vmem>>, vector<1x1x8x4xbf16>
    %11 = vector.shape_cast %10 : vector<1x1x8x4xbf16> to vector<8x4xbf16>
    %12 = vector.shape_cast %9 : vector<8x4xbf16> to vector<1x1x8x4xbf16>
    tpu.vector_store %arg5[%c0_8, %c0_9, %c0_10, %c0_11], %12 {strides = array<i32>} : memref<1x8x8x4xbf16, #tpu.memory_space<vmem>>, vector<1x1x8x4xbf16>,
    %13 = vector.extract_strided_slice %4 {offsets = [0, 64], sizes = [8, 4], strides = [1, 1]} : vector<8x96xbf16> to vector<8x4xbf16>
    %c0_12 = arith.constant 0 : index
    %c0_13 = arith.constant 0 : index
    %c0_14 = arith.constant 0 : index
    %c0_15 = arith.constant 0 : index
    %14 = vector.load %arg6[%c0_12, %c0_13, %c0_14, %c0_15] : memref<1x8x8x4xbf16, #tpu.memory_space<vmem>>, vector<1x1x8x4xbf16>
    %15 = vector.shape_cast %14 : vector<1x1x8x4xbf16> to vector<8x4xbf16>
    %16 = vector.shape_cast %13 : vector<8x4xbf16> to vector<1x1x8x4xbf16>
    tpu.vector_store %arg6[%c0_12, %c0_13, %c0_14, %c0_15], %16 {strides = array<i32>} : memref<1x8x8x4xbf16, #tpu.memory_space<vmem>>, vector<1x1x8x4xbf16>,
    %17 = vector.extract_strided_slice %4 {offsets = [0, 4], sizes = [8, 4], strides = [1, 1]} : vector<8x96xbf16> to vector<8x4xbf16>
    %c0_16 = arith.constant 0 : index
    %c1 = arith.constant 1 : index
    %c0_17 = arith.constant 0 : index
    %c0_18 = arith.constant 0 : index
    %18 = vector.load %arg4[%c0_16, %c1, %c0_17, %c0_18] : memref<1x8x8x4xbf16, #tpu.memory_space<vmem>>, vector<1x1x8x4xbf16>
    %19 = vector.shape_cast %18 : vector<1x1x8x4xbf16> to vector<8x4xbf16>
    %20 = vector.shape_cast %17 : vector<8x4xbf16> to vector<1x1x8x4xbf16>
    tpu.vector_store %arg4[%c0_16, %c1, %c0_17, %c0_18], %20 {strides = array<i32>} : memref<1x8x8x4xbf16, #tpu.memory_space<vmem>>, vector<1x1x8x4xbf16>,
    %21 = vector.extract_strided_slice %4 {offsets = [0, 36], sizes = [8, 4], strides = [1, 1]} : vector<8x96xbf16> to vector<8x4xbf16>
    %c0_19 = arith.constant 0 : index
    %c1_20 = arith.constant 1 : index
    %c0_21 = arith.constant 0 : index
    %c0_22 = arith.constant 0 : index
    %22 = vector.load %arg5[%c0_19, %c1_20, %c0_21, %c0_22] : memref<1x8x8x4xbf16, #tpu.memory_space<vmem>>, vector<1x1x8x4xbf16>
    %23 = vector.shape_cast %22 : vector<1x1x8x4xbf16> to vector<8x4xbf16>
    %24 = vector.shape_cast %21 : vector<8x4xbf16> to vector<1x1x8x4xbf16>
    tpu.vector_store %arg5[%c0_19, %c1_20, %c0_21, %c0_22], %24 {strides = array<i32>} : memref<1x8x8x4xbf16, #tpu.memory_space<vmem>>, vector<1x1x8x4xbf16>,
    %25 = vector.extract_strided_slice %4 {offsets = [0, 68], sizes = [8, 4], strides = [1, 1]} : vector<8x96xbf16> to vector<8x4xbf16>
    %c0_23 = arith.constant 0 : index
    %c1_24 = arith.constant 1 : index
    %c0_25 = arith.constant 0 : index
    %c0_26 = arith.constant 0 : index
    %26 = vector.load %arg6[%c0_23, %c1_24, %c0_25, %c0_26] : memref<1x8x8x4xbf16, #tpu.memory_space<vmem>>, vector<1x1x8x4xbf16>
    %27 = vector.shape_cast %26 : vector<1x1x8x4xbf16> to vector<8x4xbf16>
    %28 = vector.shape_cast %25 : vector<8x4xbf16> to vector<1x1x8x4xbf16>
    tpu.vector_store %arg6[%c0_23, %c1_24, %c0_25, %c0_26], %28 {strides = array<i32>} : memref<1x8x8x4xbf16, #tpu.memory_space<vmem>>, vector<1x1x8x4xbf16>,
    %29 = vector.extract_strided_slice %4 {offsets = [0, 8], sizes = [8, 4], strides = [1, 1]} : vector<8x96xbf16> to vector<8x4xbf16>
    %c0_27 = arith.constant 0 : index
    %c2 = arith.constant 2 : index
    %c0_28 = arith.constant 0 : index
    %c0_29 = arith.constant 0 : index
    %30 = vector.load %arg4[%c0_27, %c2, %c0_28, %c0_29] : memref<1x8x8x4xbf16, #tpu.memory_space<vmem>>, vector<1x1x8x4xbf16>
    %31 = vector.shape_cast %30 : vector<1x1x8x4xbf16> to vector<8x4xbf16>
    %32 = vector.shape_cast %29 : vector<8x4xbf16> to vector<1x1x8x4xbf16>
    tpu.vector_store %arg4[%c0_27, %c2, %c0_28, %c0_29], %32 {strides = array<i32>} : memref<1x8x8x4xbf16, #tpu.memory_space<vmem>>, vector<1x1x8x4xbf16>,
    %33 = vector.extract_strided_slice %4 {offsets = [0, 40], sizes = [8, 4], strides = [1, 1]} : vector<8x96xbf16> to vector<8x4xbf16>
    %c0_30 = arith.constant 0 : index
    %c2_31 = arith.constant 2 : index
    %c0_32 = arith.constant 0 : index
    %c0_33 = arith.constant 0 : index
    %34 = vector.load %arg5[%c0_30, %c2_31, %c0_32, %c0_33] : memref<1x8x8x4xbf16, #tpu.memory_space<vmem>>, vector<1x1x8x4xbf16>
    %35 = vector.shape_cast %34 : vector<1x1x8x4xbf16> to vector<8x4xbf16>
    %36 = vector.shape_cast %33 : vector<8x4xbf16> to vector<1x1x8x4xbf16>
    tpu.vector_store %arg5[%c0_30, %c2_31, %c0_32, %c0_33], %36 {strides = array<i32>} : memref<1x8x8x4xbf16, #tpu.memory_space<vmem>>, vector<1x1x8x4xbf16>,
    %37 = vector.extract_strided_slice %4 {offsets = [0, 72], sizes = [8, 4], strides = [1, 1]} : vector<8x96xbf16> to vector<8x4xbf16>
    %c0_34 = arith.constant 0 : index
    %c2_35 = arith.constant 2 : index
    %c0_36 = arith.constant 0 : index
    %c0_37 = arith.constant 0 : index
    %38 = vector.load %arg6[%c0_34, %c2_35, %c0_36, %c0_37] : memref<1x8x8x4xbf16, #tpu.memory_space<vmem>>, vector<1x1x8x4xbf16>
    %39 = vector.shape_cast %38 : vector<1x1x8x4xbf16> to vector<8x4xbf16>
    %40 = vector.shape_cast %37 : vector<8x4xbf16> to vector<1x1x8x4xbf16>
    tpu.vector_store %arg6[%c0_34, %c2_35, %c0_36, %c0_37], %40 {strides = array<i32>} : memref<1x8x8x4xbf16, #tpu.memory_space<vmem>>, vector<1x1x8x4xbf16>,
    %41 = vector.extract_strided_slice %4 {offsets = [0, 12], sizes = [8, 4], strides = [1, 1]} : vector<8x96xbf16> to vector<8x4xbf16>
    %c0_38 = arith.constant 0 : index
    %c3 = arith.constant 3 : index
    %c0_39 = arith.constant 0 : index
    %c0_40 = arith.constant 0 : index
    %42 = vector.load %arg4[%c0_38, %c3, %c0_39, %c0_40] : memref<1x8x8x4xbf16, #tpu.memory_space<vmem>>, vector<1x1x8x4xbf16>
    %43 = vector.shape_cast %42 : vector<1x1x8x4xbf16> to vector<8x4xbf16>
    %44 = vector.shape_cast %41 : vector<8x4xbf16> to vector<1x1x8x4xbf16>
    tpu.vector_store %arg4[%c0_38, %c3, %c0_39, %c0_40], %44 {strides = array<i32>} : memref<1x8x8x4xbf16, #tpu.memory_space<vmem>>, vector<1x1x8x4xbf16>,
    %45 = vector.extract_strided_slice %4 {offsets = [0, 44], sizes = [8, 4], strides = [1, 1]} : vector<8x96xbf16> to vector<8x4xbf16>
    %c0_41 = arith.constant 0 : index
    %c3_42 = arith.constant 3 : index
    %c0_43 = arith.constant 0 : index
    %c0_44 = arith.constant 0 : index
    %46 = vector.load %arg5[%c0_41, %c3_42, %c0_43, %c0_44] : memref<1x8x8x4xbf16, #tpu.memory_space<vmem>>, vector<1x1x8x4xbf16>
    %47 = vector.shape_cast %46 : vector<1x1x8x4xbf16> to vector<8x4xbf16>
    %48 = vector.shape_cast %45 : vector<8x4xbf16> to vector<1x1x8x4xbf16>
    tpu.vector_store %arg5[%c0_41, %c3_42, %c0_43, %c0_44], %48 {strides = array<i32>} : memref<1x8x8x4xbf16, #tpu.memory_space<vmem>>, vector<1x1x8x4xbf16>,
    %49 = vector.extract_strided_slice %4 {offsets = [0, 76], sizes = [8, 4], strides = [1, 1]} : vector<8x96xbf16> to vector<8x4xbf16>
    %c0_45 = arith.constant 0 : index
    %c3_46 = arith.constant 3 : index
    %c0_47 = arith.constant 0 : index
    %c0_48 = arith.constant 0 : index
    %50 = vector.load %arg6[%c0_45, %c3_46, %c0_47, %c0_48] : memref<1x8x8x4xbf16, #tpu.memory_space<vmem>>, vector<1x1x8x4xbf16>
    %51 = vector.shape_cast %50 : vector<1x1x8x4xbf16> to vector<8x4xbf16>
    %52 = vector.shape_cast %49 : vector<8x4xbf16> to vector<1x1x8x4xbf16>
    tpu.vector_store %arg6[%c0_45, %c3_46, %c0_47, %c0_48], %52 {strides = array<i32>} : memref<1x8x8x4xbf16, #tpu.memory_space<vmem>>, vector<1x1x8x4xbf16>,
    %53 = vector.extract_strided_slice %4 {offsets = [0, 16], sizes = [8, 4], strides = [1, 1]} : vector<8x96xbf16> to vector<8x4xbf16>
    %c0_49 = arith.constant 0 : index
    %c4 = arith.constant 4 : index
    %c0_50 = arith.constant 0 : index
    %c0_51 = arith.constant 0 : index
    %54 = vector.load %arg4[%c0_49, %c4, %c0_50, %c0_51] : memref<1x8x8x4xbf16, #tpu.memory_space<vmem>>, vector<1x1x8x4xbf16>
    %55 = vector.shape_cast %54 : vector<1x1x8x4xbf16> to vector<8x4xbf16>
    %56 = vector.shape_cast %53 : vector<8x4xbf16> to vector<1x1x8x4xbf16>
    tpu.vector_store %arg4[%c0_49, %c4, %c0_50, %c0_51], %56 {strides = array<i32>} : memref<1x8x8x4xbf16, #tpu.memory_space<vmem>>, vector<1x1x8x4xbf16>,
    %57 = vector.extract_strided_slice %4 {offsets = [0, 48], sizes = [8, 4], strides = [1, 1]} : vector<8x96xbf16> to vector<8x4xbf16>
    %c0_52 = arith.constant 0 : index
    %c4_53 = arith.constant 4 : index
    %c0_54 = arith.constant 0 : index
    %c0_55 = arith.constant 0 : index
    %58 = vector.load %arg5[%c0_52, %c4_53, %c0_54, %c0_55] : memref<1x8x8x4xbf16, #tpu.memory_space<vmem>>, vector<1x1x8x4xbf16>
    %59 = vector.shape_cast %58 : vector<1x1x8x4xbf16> to vector<8x4xbf16>
    %60 = vector.shape_cast %57 : vector<8x4xbf16> to vector<1x1x8x4xbf16>
    tpu.vector_store %arg5[%c0_52, %c4_53, %c0_54, %c0_55], %60 {strides = array<i32>} : memref<1x8x8x4xbf16, #tpu.memory_space<vmem>>, vector<1x1x8x4xbf16>,
    %61 = vector.extract_strided_slice %4 {offsets = [0, 80], sizes = [8, 4], strides = [1, 1]} : vector<8x96xbf16> to vector<8x4xbf16>
    %c0_56 = arith.constant 0 : index
    %c4_57 = arith.constant 4 : index
    %c0_58 = arith.constant 0 : index
    %c0_59 = arith.constant 0 : index
    %62 = vector.load %arg6[%c0_56, %c4_57, %c0_58, %c0_59] : memref<1x8x8x4xbf16, #tpu.memory_space<vmem>>, vector<1x1x8x4xbf16>
    %63 = vector.shape_cast %62 : vector<1x1x8x4xbf16> to vector<8x4xbf16>
    %64 = vector.shape_cast %61 : vector<8x4xbf16> to vector<1x1x8x4xbf16>
    tpu.vector_store %arg6[%c0_56, %c4_57, %c0_58, %c0_59], %64 {strides = array<i32>} : memref<1x8x8x4xbf16, #tpu.memory_space<vmem>>, vector<1x1x8x4xbf16>,
    %65 = vector.extract_strided_slice %4 {offsets = [0, 20], sizes = [8, 4], strides = [1, 1]} : vector<8x96xbf16> to vector<8x4xbf16>
    %c0_60 = arith.constant 0 : index
    %c5 = arith.constant 5 : index
    %c0_61 = arith.constant 0 : index
    %c0_62 = arith.constant 0 : index
    %66 = vector.load %arg4[%c0_60, %c5, %c0_61, %c0_62] : memref<1x8x8x4xbf16, #tpu.memory_space<vmem>>, vector<1x1x8x4xbf16>
    %67 = vector.shape_cast %66 : vector<1x1x8x4xbf16> to vector<8x4xbf16>
    %68 = vector.shape_cast %65 : vector<8x4xbf16> to vector<1x1x8x4xbf16>
    tpu.vector_store %arg4[%c0_60, %c5, %c0_61, %c0_62], %68 {strides = array<i32>} : memref<1x8x8x4xbf16, #tpu.memory_space<vmem>>, vector<1x1x8x4xbf16>,
    %69 = vector.extract_strided_slice %4 {offsets = [0, 52], sizes = [8, 4], strides = [1, 1]} : vector<8x96xbf16> to vector<8x4xbf16>
    %c0_63 = arith.constant 0 : index
    %c5_64 = arith.constant 5 : index
    %c0_65 = arith.constant 0 : index
    %c0_66 = arith.constant 0 : index
    %70 = vector.load %arg5[%c0_63, %c5_64, %c0_65, %c0_66] : memref<1x8x8x4xbf16, #tpu.memory_space<vmem>>, vector<1x1x8x4xbf16>
    %71 = vector.shape_cast %70 : vector<1x1x8x4xbf16> to vector<8x4xbf16>
    %72 = vector.shape_cast %69 : vector<8x4xbf16> to vector<1x1x8x4xbf16>
    tpu.vector_store %arg5[%c0_63, %c5_64, %c0_65, %c0_66], %72 {strides = array<i32>} : memref<1x8x8x4xbf16, #tpu.memory_space<vmem>>, vector<1x1x8x4xbf16>,
    %73 = vector.extract_strided_slice %4 {offsets = [0, 84], sizes = [8, 4], strides = [1, 1]} : vector<8x96xbf16> to vector<8x4xbf16>
    %c0_67 = arith.constant 0 : index
    %c5_68 = arith.constant 5 : index
    %c0_69 = arith.constant 0 : index
    %c0_70 = arith.constant 0 : index
    %74 = vector.load %arg6[%c0_67, %c5_68, %c0_69, %c0_70] : memref<1x8x8x4xbf16, #tpu.memory_space<vmem>>, vector<1x1x8x4xbf16>
    %75 = vector.shape_cast %74 : vector<1x1x8x4xbf16> to vector<8x4xbf16>
    %76 = vector.shape_cast %73 : vector<8x4xbf16> to vector<1x1x8x4xbf16>
    tpu.vector_store %arg6[%c0_67, %c5_68, %c0_69, %c0_70], %76 {strides = array<i32>} : memref<1x8x8x4xbf16, #tpu.memory_space<vmem>>, vector<1x1x8x4xbf16>,
    %77 = vector.extract_strided_slice %4 {offsets = [0, 24], sizes = [8, 4], strides = [1, 1]} : vector<8x96xbf16> to vector<8x4xbf16>
    %c0_71 = arith.constant 0 : index
    %c6 = arith.constant 6 : index
    %c0_72 = arith.constant 0 : index
    %c0_73 = arith.constant 0 : index
    %78 = vector.load %arg4[%c0_71, %c6, %c0_72, %c0_73] : memref<1x8x8x4xbf16, #tpu.memory_space<vmem>>, vector<1x1x8x4xbf16>
    %79 = vector.shape_cast %78 : vector<1x1x8x4xbf16> to vector<8x4xbf16>
    %80 = vector.shape_cast %77 : vector<8x4xbf16> to vector<1x1x8x4xbf16>
    tpu.vector_store %arg4[%c0_71, %c6, %c0_72, %c0_73], %80 {strides = array<i32>} : memref<1x8x8x4xbf16, #tpu.memory_space<vmem>>, vector<1x1x8x4xbf16>,
    %81 = vector.extract_strided_slice %4 {offsets = [0, 56], sizes = [8, 4], strides = [1, 1]} : vector<8x96xbf16> to vector<8x4xbf16>
    %c0_74 = arith.constant 0 : index
    %c6_75 = arith.constant 6 : index
    %c0_76 = arith.constant 0 : index
    %c0_77 = arith.constant 0 : index
    %82 = vector.load %arg5[%c0_74, %c6_75, %c0_76, %c0_77] : memref<1x8x8x4xbf16, #tpu.memory_space<vmem>>, vector<1x1x8x4xbf16>
    %83 = vector.shape_cast %82 : vector<1x1x8x4xbf16> to vector<8x4xbf16>
    %84 = vector.shape_cast %81 : vector<8x4xbf16> to vector<1x1x8x4xbf16>
    tpu.vector_store %arg5[%c0_74, %c6_75, %c0_76, %c0_77], %84 {strides = array<i32>} : memref<1x8x8x4xbf16, #tpu.memory_space<vmem>>, vector<1x1x8x4xbf16>,
    %85 = vector.extract_strided_slice %4 {offsets = [0, 88], sizes = [8, 4], strides = [1, 1]} : vector<8x96xbf16> to vector<8x4xbf16>
    %c0_78 = arith.constant 0 : index
    %c6_79 = arith.constant 6 : index
    %c0_80 = arith.constant 0 : index
    %c0_81 = arith.constant 0 : index
    %86 = vector.load %arg6[%c0_78, %c6_79, %c0_80, %c0_81] : memref<1x8x8x4xbf16, #tpu.memory_space<vmem>>, vector<1x1x8x4xbf16>
    %87 = vector.shape_cast %86 : vector<1x1x8x4xbf16> to vector<8x4xbf16>
    %88 = vector.shape_cast %85 : vector<8x4xbf16> to vector<1x1x8x4xbf16>
    tpu.vector_store %arg6[%c0_78, %c6_79, %c0_80, %c0_81], %88 {strides = array<i32>} : memref<1x8x8x4xbf16, #tpu.memory_space<vmem>>, vector<1x1x8x4xbf16>,
    %89 = vector.extract_strided_slice %4 {offsets = [0, 28], sizes = [8, 4], strides = [1, 1]} : vector<8x96xbf16> to vector<8x4xbf16>
    %c0_82 = arith.constant 0 : index
    %c7 = arith.constant 7 : index
    %c0_83 = arith.constant 0 : index
    %c0_84 = arith.constant 0 : index
    %90 = vector.load %arg4[%c0_82, %c7, %c0_83, %c0_84] : memref<1x8x8x4xbf16, #tpu.memory_space<vmem>>, vector<1x1x8x4xbf16>
    %91 = vector.shape_cast %90 : vector<1x1x8x4xbf16> to vector<8x4xbf16>
    %92 = vector.shape_cast %89 : vector<8x4xbf16> to vector<1x1x8x4xbf16>
    tpu.vector_store %arg4[%c0_82, %c7, %c0_83, %c0_84], %92 {strides = array<i32>} : memref<1x8x8x4xbf16, #tpu.memory_space<vmem>>, vector<1x1x8x4xbf16>,
    %93 = vector.extract_strided_slice %4 {offsets = [0, 60], sizes = [8, 4], strides = [1, 1]} : vector<8x96xbf16> to vector<8x4xbf16>
    %c0_85 = arith.constant 0 : index
    %c7_86 = arith.constant 7 : index
    %c0_87 = arith.constant 0 : index
    %c0_88 = arith.constant 0 : index
    %94 = vector.load %arg5[%c0_85, %c7_86, %c0_87, %c0_88] : memref<1x8x8x4xbf16, #tpu.memory_space<vmem>>, vector<1x1x8x4xbf16>
    %95 = vector.shape_cast %94 : vector<1x1x8x4xbf16> to vector<8x4xbf16>
    %96 = vector.shape_cast %93 : vector<8x4xbf16> to vector<1x1x8x4xbf16>
    tpu.vector_store %arg5[%c0_85, %c7_86, %c0_87, %c0_88], %96 {strides = array<i32>} : memref<1x8x8x4xbf16, #tpu.memory_space<vmem>>, vector<1x1x8x4xbf16>,
    %97 = vector.extract_strided_slice %4 {offsets = [0, 92], sizes = [8, 4], strides = [1, 1]} : vector<8x96xbf16> to vector<8x4xbf16>
    %c0_89 = arith.constant 0 : index
    %c7_90 = arith.constant 7 : index
    %c0_91 = arith.constant 0 : index
    %c0_92 = arith.constant 0 : index
    %98 = vector.load %arg6[%c0_89, %c7_90, %c0_91, %c0_92] : memref<1x8x8x4xbf16, #tpu.memory_space<vmem>>, vector<1x1x8x4xbf16>
    %99 = vector.shape_cast %98 : vector<1x1x8x4xbf16> to vector<8x4xbf16>
    %100 = vector.shape_cast %97 : vector<8x4xbf16> to vector<1x1x8x4xbf16>
    tpu.vector_store %arg6[%c0_89, %c7_90, %c0_91, %c0_92], %100 {strides = array<i32>} : memref<1x8x8x4xbf16, #tpu.memory_space<vmem>>, vector<1x1x8x4xbf16>,
    return
  }
  func.func @transform_0(%arg0: i32, %arg1: i32) -> (i32, i32, i32) {
    %c0_i32 = arith.constant 0 : i32
    %c0_i32_0 = arith.constant 0 : i32
    return %arg0, %arg1, %c0_i32 : i32, i32, i32
  }
  func.func @transform_1(%arg0: i32, %arg1: i32) -> (i32, i32) {
    %c0_i32 = arith.constant 0 : i32
    %c0_i32_0 = arith.constant 0 : i32
    %c0_i32_1 = arith.constant 0 : i32
    return %c0_i32, %c0_i32_0 : i32, i32
  }
  func.func @transform_2(%arg0: i32, %arg1: i32) -> (i32, i32, i32, i32) {
    %c0_i32 = arith.constant 0 : i32
    %c0_i32_0 = arith.constant 0 : i32
    %c0_i32_1 = arith.constant 0 : i32
    return %arg0, %c0_i32, %arg1, %c0_i32_0 : i32, i32, i32, i32
  }
  func.func @transform_3(%arg0: i32, %arg1: i32) -> (i32, i32, i32, i32) {
    %c0_i32 = arith.constant 0 : i32
    %c0_i32_0 = arith.constant 0 : i32
    %c0_i32_1 = arith.constant 0 : i32
    return %arg0, %c0_i32, %arg1, %c0_i32_0 : i32, i32, i32, i32
  }
  func.func @transform_4(%arg0: i32, %arg1: i32) -> (i32, i32, i32, i32) {
    %c0_i32 = arith.constant 0 : i32
    %c0_i32_0 = arith.constant 0 : i32
    %c0_i32_1 = arith.constant 0 : i32
    return %arg0, %c0_i32, %arg1, %c0_i32_0 : i32, i32, i32, i32
  }
}

</mosaic_0001>

<bundles_post_ra>
// kernel: tpu_custom_call.1
= control target key start
LH: loop header
LB: loop body
LE: loop exit
PB: predicated region body
PF: predicated region fallthrough
CT: control target
= control target key end

     0   :  { %10 = vsyncpa [#allocation3], 0  ;;  %s1210_s0 = inlined_call_operand.hbm [shape: bf16[2,8,32], index: 0, kind: input, shape index: {}]   ;;  %s1211_s1 = inlined_call_operand.hbm [shape: bf16[32,96], index: 1, kind: input, shape index: {}]   ;;  %s1212_s2 = inlined_call_operand.vmem [shape: bf16[2,8,8,4], index: 2, kind: output, shape index: {0}]   ;;  %s1213_s3 = inlined_call_operand.vmem [shape: bf16[2,8,8,4], index: 3, kind: output, shape index: {1}]   ;;  %s1214_s4 = inlined_call_operand.vmem [shape: bf16[2,8,8,4], index: 4, kind: output, shape index: {2}]  }
   0x1   :  { %12 = vsyncpa [#allocation3 + $0x1], 0 }
   0x2   :  { %13 = vsyncpa [#allocation5], 0  ;;  %s990_s15 = smov 0   ;;  %s992_s16 = smov 0  }
   0x3   :  { %s994_s17 = smov 0   ;;  %s996_s18 = smov 0  }
   0x4   :  { %s998_s19 = smov 0   ;;  %s1000_s20 = smov 0  }
   0x5 LB: > { %s669_s21 = sadd.s32 4294967295, %s934_s20   ;;  %p53_p0 = scmp.ne.s32.totalorder %s918_s16, %s914_s15  ;;  %s934_s20 = sphi %s1000_s20, %s19_s20   ;;  %s930_s19 = sphi %s998_s19, %s1231_s19   ;;  %s926_s18 = sphi %s996_s18, %s1230_s18   ;;  %s922_s17 = sphi %s994_s17, %s1229_s17   ;;  %s918_s16 = sphi %s992_s16, %s1228_s16   ;;  %s914_s15 = sphi %s990_s15, %s1227_s15  }
   0x6   : > { %p1020_p1 = scmp.eq.s32.totalorder %s669_s21, 0  ;;  %p671_p2 = scmp.ge.s32.totalorder %s934_s20, 1 }
   0x7   : > { %p169_p3 = scmp.lt.s32.totalorder %s934_s20, 3  ;;  %s936_s25 = smov [#allocation4]  }
   0x8   : > { %s1219_s22 = scalar_select %p1020_p1, 1, 0 }
   0x9   : > { %p1028_p4 = por %p1020_p1, %p53_p0  ;;  %p1032_p5 = pnand %p671_p2, %p169_p3 }
   0xa   : > { %s181_s26 = sshll.u32 %s936_s25, 4  ;;  %s31_s28 = sadd.s32 1, %s930_s19  ;;  %s182_s26 = int_to_ptr.vmem [resolvable:$true] %s181_s26 }
   0xb   : > { %s1220_s23 = scalar_select %p1028_p4, 1, 0 }
   0xc   : > { %s1221_s24 = scalar_select %p1032_p5, 1, 0 }
   0xd   : > { %p733_p6 = pneg %p1032_p5  ;;  %s822_s5 = scalar_lea.hbm %s1211_s1, 256 }
   0xe   : > { %p823_p8 = scmp.ne.s32.totalorder %s1211_s1, %s822_s5  ;;  %p829_p12 = scmp.lt.u32.totalorder %s822_s5, %s1211_s1 }
   0xf   : > { %p1040_p7 = pnand %p733_p6, %p1020_p1 }
  0x11   : > { %p824_p9 = pneg %p1040_p7 }
  0x13   : > { %p825_p10 = pnand %p824_p9, %p823_p8 }
  0x15   : > { %p826_p11 = pneg %p825_p10 }
  0x17   : > { %p831_p13 = pnand %p829_p12, %p826_p11 }
  0x19   : > { %834 = shalt.err (!%p831_p13)
}
  0x1a   : > { %s835_s10 = scalar_lea.vmem %s182_s26, 256  ;;  %p843_p6 = scmp.lt.s32.totalorder %s182_s26, %s182_s26 }
  0x1b   : > { %p836_p0 = scmp.ne.s32.totalorder %s182_s26, %s835_s10  ;;  %p844_p1 = scmp.lt.s32.totalorder %s835_s10, %s835_s10 }
  0x1d   : > { %p838_p2 = pnand %p836_p0, %p824_p9  ;;  %p845_p4 = por %p844_p1, %p843_p6 }
  0x1f   : > { %p839_p3 = pneg %p838_p2 }
  0x21   : > { %p846_p5 = pnand %p845_p4, %p839_p3 }
  0x23   : > { %849 = shalt.err (!%p846_p5)
}
  0x24   : > { %s937_s11 = smov 64   ;;  %s938_s12 = smov 4  }
  0x25   : > { %736 = dma.hbm_to_vmem [thread:$0]  (!%p1040_p7), %s1211_s1, 256, %s182_s26, [#allocation5], %s937_s11, %s937_s11, %s938_s12  }
  0x26   : > { %p33_p1 = scmp.ge.s32.totalorder %s31_s28, 2  ;;  %s40_s15 = sadd.s32 1, %s922_s17 }
  0x27   : > { %p47_p4 = scmp.ne.s32.totalorder %s922_s17, %s918_s16  ;;  %p48_p5 = scmp.eq.s32.totalorder %s934_s20, 0 }
  0x28   : > { %s1233_s28 = smov (%p33_p1, %s31_s28), 0  ;;  %p742_p9 = scmp.lt.s32.totalorder %s934_s20, 2 }
  0x29   : > { %p49_p8 = por %p48_p5, %p47_p4  ;;  %s35_s21 = ssub.s32 %s930_s19, %s1233_s28 }
  0x2a   : > { %s195_s25 = sand.u32 1, %s922_s17   ;;  %p38_p10 = scmp.eq.s32.totalorder %s35_s21, 0 }
  0x2b   : > { %s674_s29 = sshll.u32 %s195_s25, 2  ;;  %s675_s30 = sshll.u32 %s930_s19, 6 }
  0x2c   : > { %s1073_s5 = scalar_select %p38_p10, %s922_s17, %s40_s15  }
  0x2d   : > { %s1078_s26 = scalar_lea.hbm %s1210_s0, %s675_s30  ;;  %s199_s7 = scalar_lea.vmem [#allocation2], %s674_s29 }
  0x2e   : > { %s207_s8 = sshll.u32 %s199_s7, 4  ;;  %p1080_p7 = pnand %p742_p9, %p49_p8  ;;  %s1084_s8 = int_to_ptr.vmem [resolvable:$true] %s207_s8 }
  0x2f   : > { %s196_s10 = scalar_lea.sflag [#allocation3], %s195_s25  ;;  %s850_s11 = scalar_lea.hbm %s1078_s26, 64 }
  0x30   : > { %p851_p11 = scmp.ne.s32.totalorder %s1078_s26, %s850_s11  ;;  %p852_p12 = pneg %p1080_p7 }
  0x31   : > { %s855_s14 = scalar_lea.hbm %s1210_s0, 128  ;;  %p856_p2 = scmp.lt.u32.totalorder %s1078_s26, %s1210_s0 }
  0x32   : > { %p853_p13 = pnand %p852_p12, %p851_p11  ;;  %p857_p3 = scmp.lt.u32.totalorder %s855_s14, %s850_s11 }
  0x33   : > { %p859_p1 = scmp.lt.u32.totalorder %s850_s11, %s1078_s26 }
  0x34   : > { %p854_p0 = pneg %p853_p13  ;;  %p858_p6 = por %p857_p3, %p856_p2 }
  0x36   : > { %p860_p4 = por %p859_p1, %p858_p6 }
  0x38   : > { %p861_p5 = pnand %p860_p4, %p854_p0 }
  0x3a   : > { %864 = shalt.err (!%p861_p5)
}
  0x3b   : > { %s865_s25 = scalar_lea.vmem %s1084_s8, 64  ;;  %s939_s29 = smov [#allocation2]  }
  0x3c   : > { %p866_p8 = scmp.ne.s32.totalorder %s1084_s8, %s865_s25  ;;  %s870_s30 = sshll.u32 %s939_s29, 4  ;;  %s871_s30 = int_to_ptr.vmem [resolvable:$false] %s870_s30 }
  0x3d   : > { %s872_s27 = scalar_lea.vmem %s871_s30, 128  ;;  %p873_p11 = scmp.lt.s32.totalorder %s1084_s8, %s871_s30 }
  0x3e   : > { %p868_p9 = pnand %p866_p8, %p852_p12  ;;  %p874_p13 = scmp.lt.s32.totalorder %s872_s27, %s865_s25 }
  0x40   : > { %p869_p10 = pneg %p868_p9  ;;  %p875_p2 = por %p874_p13, %p873_p11 }
  0x42   : > { %p876_p3 = pnand %p875_p2, %p869_p10 }
  0x44   : > { %879 = shalt.err (!%p876_p3)
}
  0x45   : > { %740 = dma.hbm_to_vmem [thread:$0]  (!%p1080_p7), %s1078_s26, 64, %s1084_s8, %s196_s10  }
  0x46   : > { %p1224_p0 = scmp.ne.s32.totalorder %s1221_s24, 0 }
  0x47   : > { %s218_s6 = sand.u32 (!%p1224_p0), 1, %s918_s16   ;;  %p1225_p12 = scmp.ne.s32.totalorder (!%p1224_p0), %s1220_s23, 0 }
  0x48   : > { %216 = sbr.rel (%p1224_p0) target bundleno = 466 (0x1d2), region = 28  ;;  %s677_s7 = sshll.u32 (!%p1224_p0), %s218_s6, 2 }
  0x49   : > { %s219_s11 = scalar_lea.sflag (!%p1224_p0), [#allocation3], %s218_s6  ;;  %s222_s12 = scalar_lea.vmem (!%p1224_p0), [#allocation2], %s677_s7 }
  0x4f   : > { %905 = dma.done.wait (%p1225_p12), %s219_s11, 64  }
  0x50   : > { %907 = vsyncadd (%p1225_p12), %s219_s11, 4294967232  ;;  %p1226_p6 = scmp.ne.s32.totalorder %s1219_s22, 0 }
  0x52   : > { %909 = dma.done.wait (%p1226_p6), [#allocation5], 256  }
  0x53   : > { %911 = vsyncadd (%p1226_p6), [#allocation5], 4294967040  ;;  %v940_v0 = vmov 0.0   ;;  %vm941_vm0 = vmmov 0   ;;  %v820_v1 = vld [vmem:[#allocation4] sm:$0xff]   ;;  %v821_v2 = vld [vmem:[#allocation4 + $0x8] sm:$0xff]  }
  0x54   : > { %719 = vmatprep.subr.bf16.mxu0 %v940_v0  ;;  %723 = vmatprep.mubr.msk.bf16.mxu0 %vm941_vm0, %v940_v0  ;;  %v295_v3 = vld [vmem:[%s222_s12] sm:$0xf]  ;;  %vm312_vm1 = vcmask 261120   ;;  %p270_p7 = scmp.lt.s32.totalorder %s926_s18, 1  ;;  %vm357_vm2 = vcmask 27648   ;;  %s942_s8 = smov 124  }
  0x55   : > { %720 = vmatpush3.bf16.msra.mxu0 %v820_v1  ;;  %s943_s9 = smov 96   ;;  %s945_s10 = smov 64  }
  0x56   : > { %721 = vmatprep.subr.bf16.mxu0 %v940_v0  ;;  %s1235_s18 = smov (!%p270_p7, %s926_s18), 1  ;;  %s946_s13 = smov 120  }
  0x57   : > { %s1124_s23 = sshll.u32 %s1235_s18, 5  ;;  %s944_s18 = smov 92  }
  0x58   : > { %s1130_s26 = scalar_lea.vmem %s1212_s2, %s1124_s23  ;;  %s947_s14 = smov 60  }
  0x59   : > { %722 = vmatpush3.bf16.msra.mxu0 %v821_v2  ;;  %s948_s15 = smov 56   ;;  %s949_s21 = smov 88  }
  0x5a   : > { %s950_s25 = smov 84   ;;  %s951_s29 = smov 116  }
  0x5b   : > { %s952_s30 = smov 112   ;;  %s953_s27 = smov 52  }
  0x5c   : > { %724 = vmatmul.mubr.msk.bf16.vlgmr.msra.gmra.mrb[0].mxu0 %vm312_vm1, %v295_v3  ;;  %s954_s6 = smov 48   ;;  %s955_s7 = smov 80  }
  0x5d   : > { %s956_s11 = smov 76   ;;  %s957_s12 = smov 108  }
  0x5e   : > { %s958_s22 = smov 104   ;;  %s959_s24 = smov 44  }
 0x12f   : > { %v350_v4 = vpop.f32.mrb[0].mxu0 }
 0x130   : > { %v356_v5 = vpack.c.bf16 %v350_v4, %v350_v4  ;;  %v725_v6 = vpop.f32.mrb[1].mxu0 }
 0x131   : > { %v353_v7 = vpop.f32.mrb[2].mxu0 }
 0x132   : > { %370 = vrot.lane.b32.xlu1 %v356_v5, %s942_s8  ;;  %362 = vrot.lane.b32.xlu0 %v356_v5, %s943_s9  ;;  %v726_v8 = vpop.f32.mrb[3].mxu0  ;;  %358 = vst.msk [vmem:[%s1130_s26] sm:$0xf] %vm357_vm2, %v356_v5  ;;  %s960_s8 = smov 40   ;;  %s961_s9 = smov 72  }
 0x136   : > { %375 = vrot.lane.b32.xlu1 %v356_v5, %s944_s18  ;;  %366 = vrot.lane.b32.xlu0 %v356_v5, %s945_s10  ;;  %s962_s18 = smov 68   ;;  %s963_s10 = smov 100  }
 0x13a   : > { %385 = vrot.lane.b32.xlu1 %v356_v5, %s946_s13  ;;  %380 = vrot.lane.b32.xlu0 %v356_v5, %s947_s14  ;;  %s964_s13 = smov 36  }
 0x13e   : > { %395 = vrot.lane.b32.xlu1 %v356_v5, %s948_s15  ;;  %390 = vrot.lane.b32.xlu0 %v356_v5, %s949_s21  ;;  %s1138_s21 = scalar_lea.vmem %s1213_s3, %s1124_s23 }
 0x142   : > { %405 = vrot.lane.b32.xlu1 %v356_v5, %s950_s25  ;;  %400 = vrot.lane.b32.xlu0 %v356_v5, %s951_s29 }
 0x146   : > { %415 = vrot.lane.b32.xlu1 %v356_v5, %s952_s30  ;;  %410 = vrot.lane.b32.xlu0 %v356_v5, %s953_s27  ;;  %s1148_s30 = scalar_lea.vmem %s1214_s4, %s1124_s23 }
 0x14a   : > { %425 = vrot.lane.b32.xlu1 %v356_v5, %s954_s6  ;;  %420 = vrot.lane.b32.xlu0 %v356_v5, %s955_s7 }
 0x14e   : > { %435 = vrot.lane.b32.xlu1 %v356_v5, %s956_s11  ;;  %430 = vrot.lane.b32.xlu0 %v356_v5, %s957_s12 }
 0x152   : > { %445 = vrot.lane.b32.xlu1 %v356_v5, %s958_s22  ;;  %440 = vrot.lane.b32.xlu0 %v356_v5, %s959_s24 }
 0x156   : > { %455 = vrot.lane.b32.xlu1 %v356_v5, %s960_s8  ;;  %450 = vrot.lane.b32.xlu0 %v356_v5, %s961_s9 }
 0x15a   : > { %465 = vrot.lane.b32.xlu1 %v356_v5, %s962_s18  ;;  %460 = vrot.lane.b32.xlu0 %v356_v5, %s963_s10 }
 0x15e   : > { %470 = vrot.lane.b32.xlu0 %v356_v5, %s964_s13 }
 0x1a4   : > { %v371_v9 = vpop.permute.xlu1 %370  ;;  %v363_v10 = vpop.permute.xlu0 %362 }
 0x1a5   : > { %689 = vst.msk [vmem:[%s1130_s26 + $0x4] sm:$0xf] %vm357_vm2, %v371_v9  ;;  %365 = vst.msk [vmem:[%s1138_s21] sm:$0xf] %vm357_vm2, %v363_v10 }
 0x1a8   : > { %v376_v11 = vpop.permute.xlu1 %375  ;;  %v367_v12 = vpop.permute.xlu0 %366 }
 0x1a9   : > { %690 = vst.msk [vmem:[%s1138_s21 + $0x4] sm:$0xf] %vm357_vm2, %v376_v11  ;;  %369 = vst.msk [vmem:[%s1148_s30] sm:$0xf] %vm357_vm2, %v367_v12 }
 0x1ac   : > { %v386_v13 = vpop.permute.xlu1 %385  ;;  %v381_v14 = vpop.permute.xlu0 %380 }
 0x1ad   : > { %692 = vst.msk [vmem:[%s1130_s26 + $0x8] sm:$0xf] %vm357_vm2, %v386_v13  ;;  %691 = vst.msk [vmem:[%s1148_s30 + $0x4] sm:$0xf] %vm357_vm2, %v381_v14 }
 0x1b0   : > { %v396_v15 = vpop.permute.xlu1 %395  ;;  %v391_v16 = vpop.permute.xlu0 %390 }
 0x1b1   : > { %694 = vst.msk [vmem:[%s1148_s30 + $0x8] sm:$0xf] %vm357_vm2, %v396_v15  ;;  %693 = vst.msk [vmem:[%s1138_s21 + $0x8] sm:$0xf] %vm357_vm2, %v391_v16 }
 0x1b4   : > { %v406_v17 = vpop.permute.xlu1 %405  ;;  %v401_v18 = vpop.permute.xlu0 %400 }
 0x1b5   : > { %696 = vst.msk [vmem:[%s1138_s21 + $0xc] sm:$0xf] %vm357_vm2, %v406_v17  ;;  %695 = vst.msk [vmem:[%s1130_s26 + $0xc] sm:$0xf] %vm357_vm2, %v401_v18 }
 0x1b8   : > { %v416_v19 = vpop.permute.xlu1 %415  ;;  %v411_v20 = vpop.permute.xlu0 %410 }
 0x1b9   : > { %698 = vst.msk [vmem:[%s1130_s26 + $0x10] sm:$0xf] %vm357_vm2, %v416_v19  ;;  %697 = vst.msk [vmem:[%s1148_s30 + $0xc] sm:$0xf] %vm357_vm2, %v411_v20 }
 0x1bc   : > { %v426_v21 = vpop.permute.xlu1 %425  ;;  %v421_v22 = vpop.permute.xlu0 %420 }
 0x1bd   : > { %700 = vst.msk [vmem:[%s1148_s30 + $0x10] sm:$0xf] %vm357_vm2, %v426_v21  ;;  %699 = vst.msk [vmem:[%s1138_s21 + $0x10] sm:$0xf] %vm357_vm2, %v421_v22 }
 0x1c0   : > { %v436_v23 = vpop.permute.xlu1 %435  ;;  %v431_v24 = vpop.permute.xlu0 %430 }
 0x1c1   : > { %702 = vst.msk [vmem:[%s1138_s21 + $0x14] sm:$0xf] %vm357_vm2, %v436_v23  ;;  %701 = vst.msk [vmem:[%s1130_s26 + $0x14] sm:$0xf] %vm357_vm2, %v431_v24 }
 0x1c4   : > { %v446_v25 = vpop.permute.xlu1 %445  ;;  %v441_v26 = vpop.permute.xlu0 %440 }
 0x1c5   : > { %704 = vst.msk [vmem:[%s1130_s26 + $0x18] sm:$0xf] %vm357_vm2, %v446_v25  ;;  %703 = vst.msk [vmem:[%s1148_s30 + $0x14] sm:$0xf] %vm357_vm2, %v441_v26 }
 0x1c8   : > { %v456_v27 = vpop.permute.xlu1 %455  ;;  %v451_v28 = vpop.permute.xlu0 %450 }
 0x1c9   : > { %706 = vst.msk [vmem:[%s1148_s30 + $0x18] sm:$0xf] %vm357_vm2, %v456_v27  ;;  %705 = vst.msk [vmem:[%s1138_s21 + $0x18] sm:$0xf] %vm357_vm2, %v451_v28 }
 0x1cc   : > { %v466_v29 = vpop.permute.xlu1 %465  ;;  %v461_v30 = vpop.permute.xlu0 %460 }
 0x1cd   : > { %708 = vst.msk [vmem:[%s1138_s21 + $0x1c] sm:$0xf] %vm357_vm2, %v466_v29  ;;  %707 = vst.msk [vmem:[%s1130_s26 + $0x1c] sm:$0xf] %vm357_vm2, %v461_v30 }
 0x1d0   : > { %v471_v31 = vpop.permute.xlu0 %470 }
 0x1d1   : > { %709 = vst.msk [vmem:[%s1148_s30 + $0x1c] sm:$0xf] %vm357_vm2, %v471_v31 }
 0x1d2 PF: > { %s19_s20 = sadd.s32 1, %s934_s20   ;;  %s1227_s15 = smov %s918_s16 }
 0x1d3   : > { %p16_p1 = scmp.ge.s32.totalorder %s19_s20, 4   ;;  %s1228_s16 = smov %s922_s17 }
 0x1d4   : > { %s1229_s17 = smov %s1073_s5  ;;  %s1230_s18 = smov %s930_s19 }
 0x1d5   : > { %s1231_s19 = smov %s1233_s28  ;;  %18 = sbr.rel (!%p16_p1) target bundleno = 5 (0x5), region = 117 }
 0x1dc   :  { %546 = vsyncpa [#allocation3], 1 }
 0x1dd   :  { %548 = vsyncpa [#allocation3 + $0x1], 1 }
 0x1de   :  { %549 = vsyncpa [#allocation5], 1 }

// kernel: tpu_custom_call.1
= control target key start
LH: loop header
LB: loop body
LE: loop exit
PB: predicated region body
PF: predicated region fallthrough
CT: control target
= control target key end

     0   :  { %10 = vsyncpa [#allocation3], 0  ;;  %s1210_s0 = inlined_call_operand.hbm [shape: bf16[2,8,32], index: 0, kind: input, shape index: {}]   ;;  %s1211_s1 = inlined_call_operand.hbm [shape: bf16[32,96], index: 1, kind: input, shape index: {}]   ;;  %s1212_s2 = inlined_call_operand.vmem [shape: bf16[2,8,8,4], index: 2, kind: output, shape index: {0}]   ;;  %s1213_s3 = inlined_call_operand.vmem [shape: bf16[2,8,8,4], index: 3, kind: output, shape index: {1}]   ;;  %s1214_s4 = inlined_call_operand.vmem [shape: bf16[2,8,8,4], index: 4, kind: output, shape index: {2}]  }
   0x1   :  { %12 = vsyncpa [#allocation3 + $0x1], 0 }
   0x2   :  { %13 = vsyncpa [#allocation5], 0  ;;  %s990_s15 = smov 0   ;;  %s992_s16 = smov 0  }
   0x3   :  { %s994_s17 = smov 0   ;;  %s996_s18 = smov 0  }
   0x4   :  { %s998_s19 = smov 0   ;;  %s1000_s20 = smov 0  }
   0x5 LB: > { %s669_s21 = sadd.s32 4294967295, %s934_s20   ;;  %p53_p0 = scmp.ne.s32.totalorder %s918_s16, %s914_s15  ;;  %s934_s20 = sphi %s1000_s20, %s19_s20   ;;  %s930_s19 = sphi %s998_s19, %s1231_s19   ;;  %s926_s18 = sphi %s996_s18, %s1230_s18   ;;  %s922_s17 = sphi %s994_s17, %s1229_s17   ;;  %s918_s16 = sphi %s992_s16, %s1228_s16   ;;  %s914_s15 = sphi %s990_s15, %s1227_s15  }
   0x6   : > { %p1020_p1 = scmp.eq.s32.totalorder %s669_s21, 0  ;;  %p671_p2 = scmp.ge.s32.totalorder %s934_s20, 1 }
   0x7   : > { %p169_p3 = scmp.lt.s32.totalorder %s934_s20, 3  ;;  %s936_s25 = smov [#allocation4]  }
   0x8   : > { %s1219_s22 = scalar_select %p1020_p1, 1, 0 }
   0x9   : > { %p1028_p4 = por %p1020_p1, %p53_p0  ;;  %p1032_p5 = pnand %p671_p2, %p169_p3 }
   0xa   : > { %s181_s26 = sshll.u32 %s936_s25, 4  ;;  %s31_s28 = sadd.s32 1, %s930_s19  ;;  %s182_s26 = int_to_ptr.vmem [resolvable:$true] %s181_s26 }
   0xb   : > { %s1220_s23 = scalar_select %p1028_p4, 1, 0 }
   0xc   : > { %s1221_s24 = scalar_select %p1032_p5, 1, 0 }
   0xd   : > { %p733_p6 = pneg %p1032_p5  ;;  %s822_s5 = scalar_lea.hbm %s1211_s1, 256 }
   0xe   : > { %p823_p8 = scmp.ne.s32.totalorder %s1211_s1, %s822_s5  ;;  %p829_p12 = scmp.lt.u32.totalorder %s822_s5, %s1211_s1 }
   0xf   : > { %p1040_p7 = pnand %p733_p6, %p1020_p1 }
  0x11   : > { %p824_p9 = pneg %p1040_p7 }
  0x13   : > { %p825_p10 = pnand %p824_p9, %p823_p8 }
  0x15   : > { %p826_p11 = pneg %p825_p10 }
  0x17   : > { %p831_p13 = pnand %p829_p12, %p826_p11 }
  0x19   : > { %834 = shalt.err (!%p831_p13)
}
  0x1a   : > { %s835_s10 = scalar_lea.vmem %s182_s26, 256  ;;  %p843_p6 = scmp.lt.s32.totalorder %s182_s26, %s182_s26 }
  0x1b   : > { %p836_p0 = scmp.ne.s32.totalorder %s182_s26, %s835_s10  ;;  %p844_p1 = scmp.lt.s32.totalorder %s835_s10, %s835_s10 }
  0x1d   : > { %p838_p2 = pnand %p836_p0, %p824_p9  ;;  %p845_p4 = por %p844_p1, %p843_p6 }
  0x1f   : > { %p839_p3 = pneg %p838_p2 }
  0x21   : > { %p846_p5 = pnand %p845_p4, %p839_p3 }
  0x23   : > { %849 = shalt.err (!%p846_p5)
}
  0x24   : > { %s937_s11 = smov 64   ;;  %s938_s12 = smov 4  }
  0x25   : > { %736 = dma.hbm_to_vmem [thread:$0]  (!%p1040_p7), %s1211_s1, 256, %s182_s26, [#allocation5], %s937_s11, %s937_s11, %s938_s12  }
  0x26   : > { %p33_p1 = scmp.ge.s32.totalorder %s31_s28, 2  ;;  %s40_s15 = sadd.s32 1, %s922_s17 }
  0x27   : > { %p47_p4 = scmp.ne.s32.totalorder %s922_s17, %s918_s16  ;;  %p48_p5 = scmp.eq.s32.totalorder %s934_s20, 0 }
  0x28   : > { %s1233_s28 = smov (%p33_p1, %s31_s28), 0  ;;  %p742_p9 = scmp.lt.s32.totalorder %s934_s20, 2 }
  0x29   : > { %p49_p8 = por %p48_p5, %p47_p4  ;;  %s35_s21 = ssub.s32 %s930_s19, %s1233_s28 }
  0x2a   : > { %s195_s25 = sand.u32 1, %s922_s17   ;;  %p38_p10 = scmp.eq.s32.totalorder %s35_s21, 0 }
  0x2b   : > { %s674_s29 = sshll.u32 %s195_s25, 2  ;;  %s675_s30 = sshll.u32 %s930_s19, 6 }
  0x2c   : > { %s1073_s5 = scalar_select %p38_p10, %s922_s17, %s40_s15  }
  0x2d   : > { %s1078_s26 = scalar_lea.hbm %s1210_s0, %s675_s30  ;;  %s199_s7 = scalar_lea.vmem [#allocation2], %s674_s29 }
  0x2e   : > { %s207_s8 = sshll.u32 %s199_s7, 4  ;;  %p1080_p7 = pnand %p742_p9, %p49_p8  ;;  %s1084_s8 = int_to_ptr.vmem [resolvable:$true] %s207_s8 }
  0x2f   : > { %s196_s10 = scalar_lea.sflag [#allocation3], %s195_s25  ;;  %s850_s11 = scalar_lea.hbm %s1078_s26, 64 }
  0x30   : > { %p851_p11 = scmp.ne.s32.totalorder %s1078_s26, %s850_s11  ;;  %p852_p12 = pneg %p1080_p7 }
  0x31   : > { %s855_s14 = scalar_lea.hbm %s1210_s0, 128  ;;  %p856_p2 = scmp.lt.u32.totalorder %s1078_s26, %s1210_s0 }
  0x32   : > { %p853_p13 = pnand %p852_p12, %p851_p11  ;;  %p857_p3 = scmp.lt.u32.totalorder %s855_s14, %s850_s11 }
  0x33   : > { %p859_p1 = scmp.lt.u32.totalorder %s850_s11, %s1078_s26 }
  0x34   : > { %p854_p0 = pneg %p853_p13  ;;  %p858_p6 = por %p857_p3, %p856_p2 }
  0x36   : > { %p860_p4 = por %p859_p1, %p858_p6 }
  0x38   : > { %p861_p5 = pnand %p860_p4, %p854_p0 }
  0x3a   : > { %864 = shalt.err (!%p861_p5)
}
  0x3b   : > { %s865_s25 = scalar_lea.vmem %s1084_s8, 64  ;;  %s939_s29 = smov [#allocation2]  }
  0x3c   : > { %p866_p8 = scmp.ne.s32.totalorder %s1084_s8, %s865_s25  ;;  %s870_s30 = sshll.u32 %s939_s29, 4  ;;  %s871_s30 = int_to_ptr.vmem [resolvable:$false] %s870_s30 }
  0x3d   : > { %s872_s27 = scalar_lea.vmem %s871_s30, 128  ;;  %p873_p11 = scmp.lt.s32.totalorder %s1084_s8, %s871_s30 }
  0x3e   : > { %p868_p9 = pnand %p866_p8, %p852_p12  ;;  %p874_p13 = scmp.lt.s32.totalorder %s872_s27, %s865_s25 }
  0x40   : > { %p869_p10 = pneg %p868_p9  ;;  %p875_p2 = por %p874_p13, %p873_p11 }
  0x42   : > { %p876_p3 = pnand %p875_p2, %p869_p10 }
  0x44   : > { %879 = shalt.err (!%p876_p3)
}
  0x45   : > { %740 = dma.hbm_to_vmem [thread:$0]  (!%p1080_p7), %s1078_s26, 64, %s1084_s8, %s196_s10  }
  0x46   : > { %p1224_p0 = scmp.ne.s32.totalorder %s1221_s24, 0 }
  0x47   : > { %s218_s6 = sand.u32 (!%p1224_p0), 1, %s918_s16   ;;  %p1225_p12 = scmp.ne.s32.totalorder (!%p1224_p0), %s1220_s23, 0 }
  0x48   : > { %216 = sbr.rel (%p1224_p0) target bundleno = 466 (0x1d2), region = 28  ;;  %s677_s7 = sshll.u32 (!%p1224_p0), %s218_s6, 2 }
  0x49   : > { %s219_s11 = scalar_lea.sflag (!%p1224_p0), [#allocation3], %s218_s6  ;;  %s222_s12 = scalar_lea.vmem (!%p1224_p0), [#allocation2], %s677_s7 }
  0x4f   : > { %905 = dma.done.wait (%p1225_p12), %s219_s11, 64  }
  0x50   : > { %907 = vsyncadd (%p1225_p12), %s219_s11, 4294967232  ;;  %p1226_p6 = scmp.ne.s32.totalorder %s1219_s22, 0 }
  0x52   : > { %909 = dma.done.wait (%p1226_p6), [#allocation5], 256  }
  0x53   : > { %911 = vsyncadd (%p1226_p6), [#allocation5], 4294967040  ;;  %v940_v0 = vmov 0.0   ;;  %vm941_vm0 = vmmov 0   ;;  %v820_v1 = vld [vmem:[#allocation4] sm:$0xff]   ;;  %v821_v2 = vld [vmem:[#allocation4 + $0x8] sm:$0xff]  }
  0x54   : > { %719 = vmatprep.subr.bf16.mxu0 %v940_v0  ;;  %723 = vmatprep.mubr.msk.bf16.mxu0 %vm941_vm0, %v940_v0  ;;  %v295_v3 = vld [vmem:[%s222_s12] sm:$0xf]  ;;  %vm312_vm1 = vcmask 261120   ;;  %p270_p7 = scmp.lt.s32.totalorder %s926_s18, 1  ;;  %vm357_vm2 = vcmask 27648   ;;  %s942_s8 = smov 124  }
  0x55   : > { %720 = vmatpush3.bf16.msra.mxu0 %v820_v1  ;;  %s943_s9 = smov 96   ;;  %s945_s10 = smov 64  }
  0x56   : > { %721 = vmatprep.subr.bf16.mxu0 %v940_v0  ;;  %s1235_s18 = smov (!%p270_p7, %s926_s18), 1  ;;  %s946_s13 = smov 120  }
  0x57   : > { %s1124_s23 = sshll.u32 %s1235_s18, 5  ;;  %s944_s18 = smov 92  }
  0x58   : > { %s1130_s26 = scalar_lea.vmem %s1212_s2, %s1124_s23  ;;  %s947_s14 = smov 60  }
  0x59   : > { %722 = vmatpush3.bf16.msra.mxu0 %v821_v2  ;;  %s948_s15 = smov 56   ;;  %s949_s21 = smov 88  }
  0x5a   : > { %s950_s25 = smov 84   ;;  %s951_s29 = smov 116  }
  0x5b   : > { %s952_s30 = smov 112   ;;  %s953_s27 = smov 52  }
  0x5c   : > { %724 = vmatmul.mubr.msk.bf16.vlgmr.msra.gmra.mrb[0].mxu0 %vm312_vm1, %v295_v3  ;;  %s954_s6 = smov 48   ;;  %s955_s7 = smov 80  }
  0x5d   : > { %s956_s11 = smov 76   ;;  %s957_s12 = smov 108  }
  0x5e   : > { %s958_s22 = smov 104   ;;  %s959_s24 = smov 44  }
 0x12f   : > { %v350_v4 = vpop.f32.mrb[0].mxu0 }
 0x130   : > { %v356_v5 = vpack.c.bf16 %v350_v4, %v350_v4  ;;  %v725_v6 = vpop.f32.mrb[1].mxu0 }
 0x131   : > { %v353_v7 = vpop.f32.mrb[2].mxu0 }
 0x132   : > { %370 = vrot.lane.b32.xlu1 %v356_v5, %s942_s8  ;;  %362 = vrot.lane.b32.xlu0 %v356_v5, %s943_s9  ;;  %v726_v8 = vpop.f32.mrb[3].mxu0  ;;  %358 = vst.msk [vmem:[%s1130_s26] sm:$0xf] %vm357_vm2, %v356_v5  ;;  %s960_s8 = smov 40   ;;  %s961_s9 = smov 72  }
 0x136   : > { %375 = vrot.lane.b32.xlu1 %v356_v5, %s944_s18  ;;  %366 = vrot.lane.b32.xlu0 %v356_v5, %s945_s10  ;;  %s962_s18 = smov 68   ;;  %s963_s10 = smov 100  }
 0x13a   : > { %385 = vrot.lane.b32.xlu1 %v356_v5, %s946_s13  ;;  %380 = vrot.lane.b32.xlu0 %v356_v5, %s947_s14  ;;  %s964_s13 = smov 36  }
 0x13e   : > { %395 = vrot.lane.b32.xlu1 %v356_v5, %s948_s15  ;;  %390 = vrot.lane.b32.xlu0 %v356_v5, %s949_s21  ;;  %s1138_s21 = scalar_lea.vmem %s1213_s3, %s1124_s23 }
 0x142   : > { %405 = vrot.lane.b32.xlu1 %v356_v5, %s950_s25  ;;  %400 = vrot.lane.b32.xlu0 %v356_v5, %s951_s29 }
 0x146   : > { %415 = vrot.lane.b32.xlu1 %v356_v5, %s952_s30  ;;  %410 = vrot.lane.b32.xlu0 %v356_v5, %s953_s27  ;;  %s1148_s30 = scalar_lea.vmem %s1214_s4, %s1124_s23 }
 0x14a   : > { %425 = vrot.lane.b32.xlu1 %v356_v5, %s954_s6  ;;  %420 = vrot.lane.b32.xlu0 %v356_v5, %s955_s7 }
 0x14e   : > { %435 = vrot.lane.b32.xlu1 %v356_v5, %s956_s11  ;;  %430 = vrot.lane.b32.xlu0 %v356_v5, %s957_s12 }
 0x152   : > { %445 = vrot.lane.b32.xlu1 %v356_v5, %s958_s22  ;;  %440 = vrot.lane.b32.xlu0 %v356_v5, %s959_s24 }
 0x156   : > { %455 = vrot.lane.b32.xlu1 %v356_v5, %s960_s8  ;;  %450 = vrot.lane.b32.xlu0 %v356_v5, %s961_s9 }
 0x15a   : > { %465 = vrot.lane.b32.xlu1 %v356_v5, %s962_s18  ;;  %460 = vrot.lane.b32.xlu0 %v356_v5, %s963_s10 }
 0x15e   : > { %470 = vrot.lane.b32.xlu0 %v356_v5, %s964_s13 }
 0x1a4   : > { %v371_v9 = vpop.permute.xlu1 %370  ;;  %v363_v10 = vpop.permute.xlu0 %362 }
 0x1a5   : > { %689 = vst.msk [vmem:[%s1130_s26 + $0x4] sm:$0xf] %vm357_vm2, %v371_v9  ;;  %365 = vst.msk [vmem:[%s1138_s21] sm:$0xf] %vm357_vm2, %v363_v10 }
 0x1a8   : > { %v376_v11 = vpop.permute.xlu1 %375  ;;  %v367_v12 = vpop.permute.xlu0 %366 }
 0x1a9   : > { %690 = vst.msk [vmem:[%s1138_s21 + $0x4] sm:$0xf] %vm357_vm2, %v376_v11  ;;  %369 = vst.msk [vmem:[%s1148_s30] sm:$0xf] %vm357_vm2, %v367_v12 }
 0x1ac   : > { %v386_v13 = vpop.permute.xlu1 %385  ;;  %v381_v14 = vpop.permute.xlu0 %380 }
 0x1ad   : > { %692 = vst.msk [vmem:[%s1130_s26 + $0x8] sm:$0xf] %vm357_vm2, %v386_v13  ;;  %691 = vst.msk [vmem:[%s1148_s30 + $0x4] sm:$0xf] %vm357_vm2, %v381_v14 }
 0x1b0   : > { %v396_v15 = vpop.permute.xlu1 %395  ;;  %v391_v16 = vpop.permute.xlu0 %390 }
 0x1b1   : > { %694 = vst.msk [vmem:[%s1148_s30 + $0x8] sm:$0xf] %vm357_vm2, %v396_v15  ;;  %693 = vst.msk [vmem:[%s1138_s21 + $0x8] sm:$0xf] %vm357_vm2, %v391_v16 }
 0x1b4   : > { %v406_v17 = vpop.permute.xlu1 %405  ;;  %v401_v18 = vpop.permute.xlu0 %400 }
 0x1b5   : > { %696 = vst.msk [vmem:[%s1138_s21 + $0xc] sm:$0xf] %vm357_vm2, %v406_v17  ;;  %695 = vst.msk [vmem:[%s1130_s26 + $0xc] sm:$0xf] %vm357_vm2, %v401_v18 }
 0x1b8   : > { %v416_v19 = vpop.permute.xlu1 %415  ;;  %v411_v20 = vpop.permute.xlu0 %410 }
 0x1b9   : > { %698 = vst.msk [vmem:[%s1130_s26 + $0x10] sm:$0xf] %vm357_vm2, %v416_v19  ;;  %697 = vst.msk [vmem:[%s1148_s30 + $0xc] sm:$0xf] %vm357_vm2, %v411_v20 }
 0x1bc   : > { %v426_v21 = vpop.permute.xlu1 %425  ;;  %v421_v22 = vpop.permute.xlu0 %420 }
 0x1bd   : > { %700 = vst.msk [vmem:[%s1148_s30 + $0x10] sm:$0xf] %vm357_vm2, %v426_v21  ;;  %699 = vst.msk [vmem:[%s1138_s21 + $0x10] sm:$0xf] %vm357_vm2, %v421_v22 }
 0x1c0   : > { %v436_v23 = vpop.permute.xlu1 %435  ;;  %v431_v24 = vpop.permute.xlu0 %430 }
 0x1c1   : > { %702 = vst.msk [vmem:[%s1138_s21 + $0x14] sm:$0xf] %vm357_vm2, %v436_v23  ;;  %701 = vst.msk [vmem:[%s1130_s26 + $0x14] sm:$0xf] %vm357_vm2, %v431_v24 }
 0x1c4   : > { %v446_v25 = vpop.permute.xlu1 %445  ;;  %v441_v26 = vpop.permute.xlu0 %440 }
 0x1c5   : > { %704 = vst.msk [vmem:[%s1130_s26 + $0x18] sm:$0xf] %vm357_vm2, %v446_v25  ;;  %703 = vst.msk [vmem:[%s1148_s30 + $0x14] sm:$0xf] %vm357_vm2, %v441_v26 }
 0x1c8   : > { %v456_v27 = vpop.permute.xlu1 %455  ;;  %v451_v28 = vpop.permute.xlu0 %450 }
 0x1c9   : > { %706 = vst.msk [vmem:[%s1148_s30 + $0x18] sm:$0xf] %vm357_vm2, %v456_v27  ;;  %705 = vst.msk [vmem:[%s1138_s21 + $0x18] sm:$0xf] %vm357_vm2, %v451_v28 }
 0x1cc   : > { %v466_v29 = vpop.permute.xlu1 %465  ;;  %v461_v30 = vpop.permute.xlu0 %460 }
 0x1cd   : > { %708 = vst.msk [vmem:[%s1138_s21 + $0x1c] sm:$0xf] %vm357_vm2, %v466_v29  ;;  %707 = vst.msk [vmem:[%s1130_s26 + $0x1c] sm:$0xf] %vm357_vm2, %v461_v30 }
 0x1d0   : > { %v471_v31 = vpop.permute.xlu0 %470 }
 0x1d1   : > { %709 = vst.msk [vmem:[%s1148_s30 + $0x1c] sm:$0xf] %vm357_vm2, %v471_v31 }
 0x1d2 PF: > { %s19_s20 = sadd.s32 1, %s934_s20   ;;  %s1227_s15 = smov %s918_s16 }
 0x1d3   : > { %p16_p1 = scmp.ge.s32.totalorder %s19_s20, 4   ;;  %s1228_s16 = smov %s922_s17 }
 0x1d4   : > { %s1229_s17 = smov %s1073_s5  ;;  %s1230_s18 = smov %s930_s19 }
 0x1d5   : > { %s1231_s19 = smov %s1233_s28  ;;  %18 = sbr.rel (!%p16_p1) target bundleno = 5 (0x5), region = 117 }
 0x1dc   :  { %546 = vsyncpa [#allocation3], 1 }
 0x1dd   :  { %548 = vsyncpa [#allocation3 + $0x1], 1 }
 0x1de   :  { %549 = vsyncpa [#allocation5], 1 }

</bundles_post_ra>
